<compile_context>
chip_gen: v7x
topology: tpu7x:2x2x1
jax: 0.10.0
libtpu: 0.0.40
codegen_flags: <defaults>
</compile_context>

<pallas_src>
import math

import jax
import jax.numpy as jnp
from jax.experimental import pallas as pl
from jax.experimental.pallas import tpu as pltpu


NUM_CLASSES = 10
OUT3_PAD = 128                 # lane-dense padded width for fc3 outputs
D1, D2, D3 = 784, 400, 400     # in_features of fc1 / fc2 / fc3
H1, H2 = 400, 400              # out_features of fc1 / fc2
MAX_TILE_B = 256               # batch rows per grid step (fits VMEM on v5e/v6e/v7x)


def _round_up(n, m):
    return ((n + m - 1) // m) * m


# ---------------------------- fused 3-layer kernel ----------------------------

def _fused_mlp_kernel(x_ref,
                      w1_ref, s1_ref, b1_ref,
                      w2_ref, s2_ref, b2_ref,
                      w3_ref, s3_ref, b3_ref,
                      o_ref):
    h = x_ref[...]                                            # (TB, 784) f32

    y = jnp.dot(h.astype(jnp.bfloat16), w1_ref[...],
                preferred_element_type=jnp.float32)           # MXU, f32 acc
    h = jnp.maximum(y * s1_ref[...] + b1_ref[...], 0.0)       # (TB, 400)

    y = jnp.dot(h.astype(jnp.bfloat16), w2_ref[...],
                preferred_element_type=jnp.float32)
    h = jnp.maximum(y * s2_ref[...] + b2_ref[...], 0.0)       # (TB, 400)

    y = jnp.dot(h.astype(jnp.bfloat16), w3_ref[...],
                preferred_element_type=jnp.float32)
    o_ref[...] = (y * s3_ref[...] + b3_ref[...]).astype(o_ref.dtype)  # (TB, 128)


def fused_forward(x_pad, flat_params, tb):
    """Single pallas_call, batch-tiled.  x_pad: (B_pad, 784) f32, B_pad % tb == 0."""
    B_pad, d_in = x_pad.shape
    grid = (B_pad // tb,)

    def resident_spec(shape):
        # Constant index_map -> DMA'd once, stays in VMEM across all grid steps.
        return pl.BlockSpec(shape, lambda i: (0,) * len(shape))

    in_specs = [pl.BlockSpec((tb, d_in), lambda i: (i, 0))]
    in_specs += [resident_spec(p.shape) for p in flat_params]

    flops = 2 * B_pad * (D1 * H1 + D2 * H2 + D3 * OUT3_PAD)
    bytes_accessed = (sum(int(p.size) * p.dtype.itemsize for p in flat_params)
                      + B_pad * (d_in + OUT3_PAD) * 4)

    return pl.pallas_call(
        _fused_mlp_kernel,
        out_shape=jax.ShapeDtypeStruct((B_pad, OUT3_PAD), jnp.float32),
        grid=grid,
        in_specs=in_specs,
        out_specs=pl.BlockSpec((tb, OUT3_PAD), lambda i: (i, 0)),
        compiler_params=pltpu.CompilerParams(
            dimension_semantics=("parallel",)),      # v7x: split batch across TCs
        cost_estimate=pl.CostEstimate(
            flops=flops, transcendentals=0, bytes_accessed=bytes_accessed),
    )(x_pad, *flat_params)


# -------------- parameter initialization (deterministic, mirrors __init__) --------------

def _softplus_inv(x):
    # stable inverse softplus: log(exp(x) - 1) = x + log(1 - exp(-x))
    return x + math.log(-math.expm1(-x))


def init_rdlinear(key, in_f, out_f, ratio=0.5, eps=0.1, out_pad=None):
    k_loc, k_mu = jax.random.split(key)

    # kaiming_normal_ (fan_in = in_f, gain sqrt(2)) then row-normalize, like torch
    loc = jax.random.normal(k_loc, (out_f, in_f), jnp.float32) * math.sqrt(2.0 / in_f)
    loc = loc / jnp.sqrt(jnp.sum(loc ** 2, axis=-1, keepdims=True))
    locT = loc.T                                           # (in_f, out_f) kernel layout

    # TODO(synk): ml_kappa() is not provided in the source; use kappa such that the
    # PowerSpherical mean cosine equals (1 - eps): kappa = (d-1)(1-eps)/eps.
    kappa_init = (in_f - 1.0) * (1.0 - eps) / eps
    conc = jnp.full((1, out_f), _softplus_inv(kappa_init), jnp.float32)

    total_var = 2.0 / in_f
    noise_var = total_var * ratio
    mu_var = total_var - noise_var
    noise_std, mu_std = math.sqrt(noise_var), math.sqrt(mu_var)
    bound = math.sqrt(3.0) * mu_std
    rho_init = math.log(math.expm1(noise_std))

    rad_mu = jax.random.uniform(k_mu, (1, out_f), jnp.float32, -bound, bound)
    rad_rho = jnp.full((1, out_f), rho_init, jnp.float32)
    bias = jnp.zeros((1, out_f), jnp.float32)              # uniform_(0, 0) == zeros

    if out_pad is not None and out_pad > out_f:
        p = out_pad - out_f
        locT = jnp.pad(locT, ((0, 0), (0, p)))             # zero columns -> zero outputs
        conc = jnp.pad(conc, ((0, 0), (0, p)))
        rad_mu = jnp.pad(rad_mu, ((0, 0), (0, p)))
        rad_rho = jnp.pad(rad_rho, ((0, 0), (0, p)))
        bias = jnp.pad(bias, ((0, 0), (0, p)))

    # bf16 weight storage (f32 accumulation in the MXU); scale/bias math stays f32.
    return locT.astype(jnp.bfloat16), conc, rad_mu, rad_rho, bias


def init_model(key, ratio=0.5, eps=0.1):
    k1, k2, k3 = jax.random.split(key, 3)
    return {
        "fc1": init_rdlinear(k1, D1, H1, ratio, eps),
        "fc2": init_rdlinear(k2, D2, H2, ratio, eps),
        "fc3": init_rdlinear(k3, D3, NUM_CLASSES, ratio, eps, out_pad=OUT3_PAD),
    }


# ----------------------------------- forward -----------------------------------

def _col_scale(conc, mu, rho, d):
    # PowerSpherical(loc, kappa).mean = loc * kappa/(kappa + d - 1)
    # LogNormal(mu, sigma).mean       = exp(mu + sigma^2/2), sigma = softplus(rho)
    kappa = jax.nn.softplus(conc)
    dir_scale = kappa / (kappa + (d - 1.0))
    sigma = jax.nn.softplus(rho)
    radius = jnp.exp(mu + 0.5 * sigma * sigma)
    return (dir_scale * radius).astype(jnp.float32)        # (1, out)


def model_forward(params, x):
    # x: (B, 1, 28, 28) NCHW -> flatten, like input.view(B, -1)
    B = x.shape[0]
    h = x.reshape(B, -1).astype(jnp.float32)

    tb = min(MAX_TILE_B, _round_up(B, 16))     # 16-sublane aligned for the bf16 cast
    B_pad = _round_up(B, tb)
    if B_pad != B:
        h = jnp.pad(h, ((0, B_pad - B), (0, 0)))

    flat = []
    for name, d in (("fc1", D1), ("fc2", D2), ("fc3", D3)):
        locT, conc, mu, rho, bias = params[name]
        flat.extend([locT, _col_scale(conc, mu, rho, float(d)), bias])

    out = fused_forward(h, flat, tb)                        # (B_pad, 128)
    return out[:B, :NUM_CLASSES]


# ---------------------- pure-JAX reference for sanity checking ----------------------

def _ref_layer(h, p, d, apply_relu):
    locT, conc, mu, rho, bias = p
    w = locT.astype(jnp.float32) * _col_scale(conc, mu, rho, float(d))
    y = jnp.dot(h, w, precision=jax.lax.Precision.HIGHEST) + bias
    return jnp.maximum(y, 0.0) if apply_relu else y


def model_forward_ref(params, x):
    B = x.shape[0]
    h = x.reshape(B, -1).astype(jnp.float32)
    h = _ref_layer(h, params["fc1"], D1, True)
    h = _ref_layer(h, params["fc2"], D2, True)
    h = _ref_layer(h, params["fc3"], D3, False)
    return h[:, :NUM_CLASSES]


if __name__ == "__main__":
    key = jax.random.PRNGKey(0)
    k_params, k_x = jax.random.split(key)

    params = init_model(k_params, ratio=0.5, eps=0.1)
    x = jax.random.normal(k_x, (2, 1, 28, 28), jnp.float32)  # NCHW, flattens to 784

    out = jax.jit(model_forward)(params, x)
    out = jax.block_until_ready(out)

    ref = model_forward_ref(params, x)
    assert out.shape == (2, NUM_CLASSES), out.shape
    # bf16 matmul operands with f32 accumulation vs HIGHEST-precision f32 reference.
    max_err = float(jnp.max(jnp.abs(out - ref)))
    assert jnp.allclose(out, ref, atol=5e-2, rtol=5e-2), max_err

    print("KERNEL_OK")
</pallas_src>

<mosaic_0001>
module attributes {stable_mosaic.version = 11 : i64} {
  func.func @_fused_mlp_kernel(%arg0: i32, %arg1: memref<16x784xf32, #tpu.memory_space<vmem>>, %arg2: memref<784x400xbf16, #tpu.memory_space<vmem>>, %arg3: memref<1x400xf32, #tpu.memory_space<vmem>>, %arg4: memref<1x400xf32, #tpu.memory_space<vmem>>, %arg5: memref<400x400xbf16, #tpu.memory_space<vmem>>, %arg6: memref<1x400xf32, #tpu.memory_space<vmem>>, %arg7: memref<1x400xf32, #tpu.memory_space<vmem>>, %arg8: memref<400x128xbf16, #tpu.memory_space<vmem>>, %arg9: memref<1x128xf32, #tpu.memory_space<vmem>>, %arg10: memref<1x128xf32, #tpu.memory_space<vmem>>, %arg11: memref<16x128xf32, #tpu.memory_space<vmem>>) attributes {dimension_semantics = [#tpu.dimension_semantics<parallel>], iteration_bounds = array<i64: 1>, scalar_prefetch = 0 : i64, scratch_operands = 0 : i64, tpu.core_type = #tpu.core_type<tc>, window_params = [{transform_indices = @transform_0, window_bounds = array<i64: 16, 784>}, {pipeline_mode = #tpu.pipeline_mode<synchronous>, transform_indices = @transform_1, window_bounds = array<i64: 784, 400>}, {pipeline_mode = #tpu.pipeline_mode<synchronous>, transform_indices = @transform_2, window_bounds = array<i64: 1, 400>}, {pipeline_mode = #tpu.pipeline_mode<synchronous>, transform_indices = @transform_3, window_bounds = array<i64: 1, 400>}, {pipeline_mode = #tpu.pipeline_mode<synchronous>, transform_indices = @transform_4, window_bounds = array<i64: 400, 400>}, {pipeline_mode = #tpu.pipeline_mode<synchronous>, transform_indices = @transform_5, window_bounds = array<i64: 1, 400>}, {pipeline_mode = #tpu.pipeline_mode<synchronous>, transform_indices = @transform_6, window_bounds = array<i64: 1, 400>}, {pipeline_mode = #tpu.pipeline_mode<synchronous>, transform_indices = @transform_7, window_bounds = array<i64: 400, 128>}, {pipeline_mode = #tpu.pipeline_mode<synchronous>, transform_indices = @transform_8, window_bounds = array<i64: 1, 128>}, {pipeline_mode = #tpu.pipeline_mode<synchronous>, transform_indices = @transform_9, window_bounds = array<i64: 1, 128>}, {transform_indices = @transform_10, window_bounds = array<i64: 16, 128>}]} {
    %c0 = arith.constant 0 : index
    %c0_0 = arith.constant 0 : index
    %0 = vector.load %arg1[%c0, %c0_0] : memref<16x784xf32, #tpu.memory_space<vmem>>, vector<16x784xf32>
    %1 = arith.truncf %0 : vector<16x784xf32> to vector<16x784xbf16>
    %c0_1 = arith.constant 0 : index
    %c0_2 = arith.constant 0 : index
    %2 = vector.load %arg2[%c0_1, %c0_2] : memref<784x400xbf16, #tpu.memory_space<vmem>>, vector<784x400xbf16>
    %cst = arith.constant dense<0.000000e+00> : vector<16x400xf32>
    %3 = tpu.matmul %1, %2, %cst {dimension_numbers = #tpu.dot_dimension_numbers<[1], [0], [0], [1], [0, 0, 1, 1], [], []>} : vector<16x784xbf16>, vector<784x400xbf16>, vector<16x400xf32> -> vector<16x400xf32>
    %c0_3 = arith.constant 0 : index
    %c0_4 = arith.constant 0 : index
    %4 = vector.load %arg3[%c0_3, %c0_4] : memref<1x400xf32, #tpu.memory_space<vmem>>, vector<1x400xf32>
    %5 = vector.broadcast %4 : vector<1x400xf32> to vector<16x400xf32>
    %6 = arith.mulf %3, %5 : vector<16x400xf32>
    %c0_5 = arith.constant 0 : index
    %c0_6 = arith.constant 0 : index
    %7 = vector.load %arg4[%c0_5, %c0_6] : memref<1x400xf32, #tpu.memory_space<vmem>>, vector<1x400xf32>
    %8 = vector.broadcast %7 : vector<1x400xf32> to vector<16x400xf32>
    %9 = arith.addf %6, %8 : vector<16x400xf32>
    %cst_7 = arith.constant 0.000000e+00 : f32
    %10 = vector.broadcast %cst_7 : f32 to vector<16x400xf32>
    %11 = arith.maximumf %9, %10 : vector<16x400xf32>
    %12 = arith.truncf %11 : vector<16x400xf32> to vector<16x400xbf16>
    %c0_8 = arith.constant 0 : index
    %c0_9 = arith.constant 0 : index
    %13 = vector.load %arg5[%c0_8, %c0_9] : memref<400x400xbf16, #tpu.memory_space<vmem>>, vector<400x400xbf16>
    %cst_10 = arith.constant dense<0.000000e+00> : vector<16x400xf32>
    %14 = tpu.matmul %12, %13, %cst_10 {dimension_numbers = #tpu.dot_dimension_numbers<[1], [0], [0], [1], [0, 0, 1, 1], [], []>} : vector<16x400xbf16>, vector<400x400xbf16>, vector<16x400xf32> -> vector<16x400xf32>
    %c0_11 = arith.constant 0 : index
    %c0_12 = arith.constant 0 : index
    %15 = vector.load %arg6[%c0_11, %c0_12] : memref<1x400xf32, #tpu.memory_space<vmem>>, vector<1x400xf32>
    %16 = vector.broadcast %15 : vector<1x400xf32> to vector<16x400xf32>
    %17 = arith.mulf %14, %16 : vector<16x400xf32>
    %c0_13 = arith.constant 0 : index
    %c0_14 = arith.constant 0 : index
    %18 = vector.load %arg7[%c0_13, %c0_14] : memref<1x400xf32, #tpu.memory_space<vmem>>, vector<1x400xf32>
    %19 = vector.broadcast %18 : vector<1x400xf32> to vector<16x400xf32>
    %20 = arith.addf %17, %19 : vector<16x400xf32>
    %cst_15 = arith.constant 0.000000e+00 : f32
    %21 = vector.broadcast %cst_15 : f32 to vector<16x400xf32>
    %22 = arith.maximumf %20, %21 : vector<16x400xf32>
    %23 = arith.truncf %22 : vector<16x400xf32> to vector<16x400xbf16>
    %c0_16 = arith.constant 0 : index
    %c0_17 = arith.constant 0 : index
    %24 = vector.load %arg8[%c0_16, %c0_17] : memref<400x128xbf16, #tpu.memory_space<vmem>>, vector<400x128xbf16>
    %cst_18 = arith.constant dense<0.000000e+00> : vector<16x128xf32>
    %25 = tpu.matmul %23, %24, %cst_18 {dimension_numbers = #tpu.dot_dimension_numbers<[1], [0], [0], [1], [0, 0, 1, 1], [], []>} : vector<16x400xbf16>, vector<400x128xbf16>, vector<16x128xf32> -> vector<16x128xf32>
    %c0_19 = arith.constant 0 : index
    %c0_20 = arith.constant 0 : index
    %26 = vector.load %arg9[%c0_19, %c0_20] : memref<1x128xf32, #tpu.memory_space<vmem>>, vector<1x128xf32>
    %27 = vector.broadcast %26 : vector<1x128xf32> to vector<16x128xf32>
    %28 = arith.mulf %25, %27 : vector<16x128xf32>
    %c0_21 = arith.constant 0 : index
    %c0_22 = arith.constant 0 : index
    %29 = vector.load %arg10[%c0_21, %c0_22] : memref<1x128xf32, #tpu.memory_space<vmem>>, vector<1x128xf32>
    %30 = vector.broadcast %29 : vector<1x128xf32> to vector<16x128xf32>
    %31 = arith.addf %28, %30 : vector<16x128xf32>
    %c0_23 = arith.constant 0 : index
    %c0_24 = arith.constant 0 : index
    %32 = vector.load %arg11[%c0_23, %c0_24] : memref<16x128xf32, #tpu.memory_space<vmem>>, vector<16x128xf32>
    tpu.vector_store %arg11[%c0_23, %c0_24], %31 {strides = array<i32>} : memref<16x128xf32, #tpu.memory_space<vmem>>, vector<16x128xf32>,
    return
  }
  func.func @transform_0(%arg0: i32) -> (i32, i32) {
    %c0_i32 = arith.constant 0 : i32
    %c0_i32_0 = arith.constant 0 : i32
    return %arg0, %c0_i32 : i32, i32
  }
  func.func @transform_1(%arg0: i32) -> (i32, i32) {
    %c0_i32 = arith.constant 0 : i32
    %c0_i32_0 = arith.constant 0 : i32
    %c0_i32_1 = arith.constant 0 : i32
    return %c0_i32, %c0_i32_0 : i32, i32
  }
  func.func @transform_2(%arg0: i32) -> (i32, i32) {
    %c0_i32 = arith.constant 0 : i32
    %c0_i32_0 = arith.constant 0 : i32
    %c0_i32_1 = arith.constant 0 : i32
    return %c0_i32, %c0_i32_0 : i32, i32
  }
  func.func @transform_3(%arg0: i32) -> (i32, i32) {
    %c0_i32 = arith.constant 0 : i32
    %c0_i32_0 = arith.constant 0 : i32
    %c0_i32_1 = arith.constant 0 : i32
    return %c0_i32, %c0_i32_0 : i32, i32
  }
  func.func @transform_4(%arg0: i32) -> (i32, i32) {
    %c0_i32 = arith.constant 0 : i32
    %c0_i32_0 = arith.constant 0 : i32
    %c0_i32_1 = arith.constant 0 : i32
    return %c0_i32, %c0_i32_0 : i32, i32
  }
  func.func @transform_5(%arg0: i32) -> (i32, i32) {
    %c0_i32 = arith.constant 0 : i32
    %c0_i32_0 = arith.constant 0 : i32
    %c0_i32_1 = arith.constant 0 : i32
    return %c0_i32, %c0_i32_0 : i32, i32
  }
  func.func @transform_6(%arg0: i32) -> (i32, i32) {
    %c0_i32 = arith.constant 0 : i32
    %c0_i32_0 = arith.constant 0 : i32
    %c0_i32_1 = arith.constant 0 : i32
    return %c0_i32, %c0_i32_0 : i32, i32
  }
  func.func @transform_7(%arg0: i32) -> (i32, i32) {
    %c0_i32 = arith.constant 0 : i32
    %c0_i32_0 = arith.constant 0 : i32
    %c0_i32_1 = arith.constant 0 : i32
    return %c0_i32, %c0_i32_0 : i32, i32
  }
  func.func @transform_8(%arg0: i32) -> (i32, i32) {
    %c0_i32 = arith.constant 0 : i32
    %c0_i32_0 = arith.constant 0 : i32
    %c0_i32_1 = arith.constant 0 : i32
    return %c0_i32, %c0_i32_0 : i32, i32
  }
  func.func @transform_9(%arg0: i32) -> (i32, i32) {
    %c0_i32 = arith.constant 0 : i32
    %c0_i32_0 = arith.constant 0 : i32
    %c0_i32_1 = arith.constant 0 : i32
    return %c0_i32, %c0_i32_0 : i32, i32
  }
  func.func @transform_10(%arg0: i32) -> (i32, i32) {
    %c0_i32 = arith.constant 0 : i32
    %c0_i32_0 = arith.constant 0 : i32
    return %arg0, %c0_i32 : i32, i32
  }
}

</mosaic_0001>

<bundles_post_ra>
// kernel: model_forward.1
= control target key start
LH: loop header
LB: loop body
LE: loop exit
PB: predicated region body
PF: predicated region fallthrough
CT: control target
= control target key end

     0   :  { %vm1233_vm0 = vcmask 130048   ;;  %s4790_s1 = inlined_call_operand.vmem [shape: bf16[784,400], index: 1, kind: input, shape index: {}]   ;;  %s4791_s0 = inlined_call_operand.vmem [shape: f32[16,784], index: 0, kind: input, shape index: {}]   ;;  %s4792_s4 = inlined_call_operand.vmem [shape: bf16[400,400], index: 4, kind: input, shape index: {}]   ;;  %s4793_s7 = inlined_call_operand.vmem [shape: bf16[400,128], index: 7, kind: input, shape index: {}]   ;;  %s4794_s2 = inlined_call_operand.vmem [shape: f32[1,400], index: 2, kind: input, shape index: {}]   ;;  %s4795_s3 = inlined_call_operand.vmem [shape: f32[1,400], index: 3, kind: input, shape index: {}]   ;;  %s4796_s5 = inlined_call_operand.vmem [shape: f32[1,400], index: 5, kind: input, shape index: {}]   ;;  %s4797_s6 = inlined_call_operand.vmem [shape: f32[1,400], index: 6, kind: input, shape index: {}]   ;;  %s4798_s8 = inlined_call_operand.vmem [shape: f32[1,128], index: 8, kind: input, shape index: {}]   ;;  %s4799_s9 = inlined_call_operand.vmem [shape: f32[1,128], index: 9, kind: input, shape index: {}]   ;;  %s4800_s10 = inlined_call_operand.vmem [shape: f32[16,128], index: 10, kind: output, shape index: {}]  }
   0x1   :  { %v3192_v0 = vld [vmem:[%s4790_s1 + $0x4] ss:$16 sps:$4 sm:$0xff]   ;;  %v3194_v1 = vld [vmem:[%s4790_s1 + $0xc] ss:$16 sps:$4 sm:$0xff]   ;;  %v3196_v2 = vld [vmem:[%s4790_s1] ss:$16 sps:$4 sm:$0xff]  }
   0x2   :  { %1237 = vmatprep.subr.bf16.mxu0 %v3192_v0  ;;  %v3197_v3 = vld [vmem:[%s4790_s1 + $0x8] ss:$16 sps:$4 sm:$0xff]   ;;  %1409 = vmatprep.subr.bf16.mxu1 %v3194_v1  ;;  %v3198_v4 = vld [vmem:[%s4790_s1 + $0x24] ss:$16 sps:$4 sm:$0xff]   ;;  %v3200_v5 = vld [vmem:[%s4790_s1 + $0x2c] ss:$16 sps:$4 sm:$0xff]  }
   0x3   :  { %1238 = vmatpush1.bf16.msra.mxu0 %v3196_v2  ;;  %1410 = vmatpush1.bf16.msra.mxu1 %v3197_v3  ;;  %v3202_v6 = vld [vmem:[%s4790_s1 + $0x20] ss:$16 sps:$4 sm:$0xff]   ;;  %v3203_v7 = vld [vmem:[%s4790_s1 + $0x28] ss:$16 sps:$4 sm:$0xff]   ;;  %v3204_v8 = vld [vmem:[%s4790_s1 + $0x44] ss:$16 sps:$4 sm:$0xff]  }
   0x4   :  { %1239 = vmatprep.subr.bf16.mxu0 %v3198_v4  ;;  %1411 = vmatprep.subr.bf16.mxu1 %v3200_v5  ;;  %v3206_v9 = vld [vmem:[%s4790_s1 + $0x4c] ss:$16 sps:$4 sm:$0xff]   ;;  %v3208_v10 = vld [vmem:[%s4790_s1 + $0x40] ss:$16 sps:$4 sm:$0xff]   ;;  %v3209_v11 = vld [vmem:[%s4790_s1 + $0x48] ss:$16 sps:$4 sm:$0xff]  }
   0x5   :  { %v3210_v12 = vld [vmem:[%s4790_s1 + $0x64] ss:$16 sps:$4 sm:$0xff]   ;;  %v3212_v13 = vld [vmem:[%s4790_s1 + $0x6c] ss:$16 sps:$4 sm:$0xff]   ;;  %v3214_v14 = vld [vmem:[%s4790_s1 + $0x60] ss:$16 sps:$4 sm:$0xff]  }
   0x6   :  { %v3215_v15 = vld [vmem:[%s4790_s1 + $0x68] ss:$16 sps:$4 sm:$0xff]   ;;  %v3216_v16 = vld [vmem:[%s4790_s1 + $0x84] ss:$16 sps:$4 sm:$0xff]   ;;  %v3218_v17 = vld [vmem:[%s4790_s1 + $0x8c] ss:$16 sps:$4 sm:$0xff]  }
   0x7   :  { %1240 = vmatpush1.bf16.msra.mxu0 %v3202_v6  ;;  %1412 = vmatpush1.bf16.msra.mxu1 %v3203_v7  ;;  %v3220_v18 = vld [vmem:[%s4790_s1 + $0x80] ss:$16 sps:$4 sm:$0xff]   ;;  %v3221_v19 = vld [vmem:[%s4790_s1 + $0x88] ss:$16 sps:$4 sm:$0xff]   ;;  %v3222_v20 = vld [vmem:[%s4790_s1 + $0xa4] ss:$16 sps:$4 sm:$0xff]  }
   0x8   :  { %1241 = vmatprep.subr.bf16.mxu0 %v3204_v8  ;;  %1413 = vmatprep.subr.bf16.mxu1 %v3206_v9  ;;  %v3224_v21 = vld [vmem:[%s4790_s1 + $0xac] ss:$16 sps:$4 sm:$0xff]   ;;  %v3226_v22 = vld [vmem:[%s4790_s1 + $0xa0] ss:$16 sps:$4 sm:$0xff]   ;;  %v3227_v23 = vld [vmem:[%s4790_s1 + $0xa8] ss:$16 sps:$4 sm:$0xff]  }
   0x9   :  { %v3228_v24 = vld [vmem:[%s4790_s1 + $0xc4] ss:$16 sps:$4 sm:$0xff]   ;;  %v3230_v25 = vld [vmem:[%s4790_s1 + $0xcc] ss:$16 sps:$4 sm:$0xff]   ;;  %v3232_v26 = vld [vmem:[%s4790_s1 + $0xc0] ss:$16 sps:$4 sm:$0xff]  }
   0xa   :  { %v3233_v27 = vld [vmem:[%s4790_s1 + $0xc8] ss:$16 sps:$4 sm:$0xff]   ;;  %v3234_v28 = vld [vmem:[%s4790_s1 + $0xe4] ss:$16 sps:$4 sm:$0xff]   ;;  %v3236_v29 = vld [vmem:[%s4790_s1 + $0xec] ss:$16 sps:$4 sm:$0xff]  }
   0xb   :  { %1242 = vmatpush1.bf16.msra.mxu0 %v3208_v10  ;;  %1414 = vmatpush1.bf16.msra.mxu1 %v3209_v11  ;;  %v3238_v30 = vld [vmem:[%s4790_s1 + $0xe0] ss:$16 sps:$4 sm:$0xff]   ;;  %v3239_v31 = vld [vmem:[%s4790_s1 + $0xe8] ss:$16 sps:$4 sm:$0xff]   ;;  %v3240_v32 = vld [vmem:[%s4790_s1 + $0x104] ss:$16 sps:$4 sm:$0xff]  }
   0xc   :  { %1243 = vmatprep.subr.bf16.mxu0 %v3210_v12  ;;  %1415 = vmatprep.subr.bf16.mxu1 %v3212_v13  ;;  %v3242_v33 = vld [vmem:[%s4790_s1 + $0x10c] ss:$16 sps:$4 sm:$0xff]   ;;  %v3244_v34 = vld [vmem:[%s4790_s1 + $0x100] ss:$16 sps:$4 sm:$0xff]   ;;  %v3245_v35 = vld [vmem:[%s4790_s1 + $0x108] ss:$16 sps:$4 sm:$0xff]  }
   0xd   :  { %v3246_v36 = vld [vmem:[%s4790_s1 + $0x124] ss:$16 sps:$4 sm:$0xff]   ;;  %v3248_v37 = vld [vmem:[%s4790_s1 + $0x12c] ss:$16 sps:$4 sm:$0xff]   ;;  %v3250_v38 = vld [vmem:[%s4790_s1 + $0x120] ss:$16 sps:$4 sm:$0xff]  }
   0xe   :  { %v3251_v39 = vld [vmem:[%s4790_s1 + $0x128] ss:$16 sps:$4 sm:$0xff]   ;;  %v3252_v40 = vld [vmem:[%s4790_s1 + $0x144] ss:$16 sps:$4 sm:$0xff]   ;;  %v3254_v41 = vld [vmem:[%s4790_s1 + $0x14c] ss:$16 sps:$4 sm:$0xff]  }
   0xf   :  { %1244 = vmatpush1.bf16.msra.mxu0 %v3214_v14  ;;  %1416 = vmatpush1.bf16.msra.mxu1 %v3215_v15  ;;  %v3256_v42 = vld [vmem:[%s4790_s1 + $0x140] ss:$16 sps:$4 sm:$0xff]   ;;  %v3257_v43 = vld [vmem:[%s4790_s1 + $0x148] ss:$16 sps:$4 sm:$0xff]   ;;  %v3258_v44 = vld [vmem:[%s4790_s1 + $0x164] ss:$16 sps:$4 sm:$0xff]  }
  0x10   :  { %1245 = vmatprep.subr.bf16.mxu0 %v3216_v16  ;;  %1417 = vmatprep.subr.bf16.mxu1 %v3218_v17  ;;  %v3260_v45 = vld [vmem:[%s4790_s1 + $0x16c] ss:$16 sps:$4 sm:$0xff]   ;;  %v44_v47 = vld [vmem:[%s4791_s0 + $0x40] sm:$0xff]  ;;  %v3263_v49 = vld [vmem:[%s4790_s1 + $0x168] ss:$16 sps:$4 sm:$0xff]  }
  0x11   :  { %v37_v46 = vld [vmem:[%s4791_s0 + $0x8] sm:$0xff]  ;;  %v3262_v48 = vld [vmem:[%s4790_s1 + $0x160] ss:$16 sps:$4 sm:$0xff]   ;;  %v3264_v51 = vld [vmem:[%s4790_s1 + $0x184] ss:$16 sps:$4 sm:$0xff]  }
  0x12   :  { %v51_v50 = vpack.c.bf16 %v44_v47, %v37_v46  ;;  %v3266_v52 = vld [vmem:[%s4790_s1 + $0x18c] ss:$16 sps:$4 sm:$0xff]   ;;  %v3268_v53 = vld [vmem:[%s4790_s1 + $0x180] ss:$16 sps:$4 sm:$0xff]   ;;  %v3269_v54 = vld [vmem:[%s4790_s1 + $0x188] ss:$16 sps:$4 sm:$0xff]  }
  0x13   :  { %1246 = vmatpush1.bf16.msra.mxu0 %v3220_v18  ;;  %1418 = vmatpush1.bf16.msra.mxu1 %v3221_v19  ;;  %v3270_v55 = vld [vmem:[%s4790_s1 + $0x1a4] ss:$16 sps:$4 sm:$0xff]   ;;  %v3272_v56 = vld [vmem:[%s4790_s1 + $0x1ac] ss:$16 sps:$4 sm:$0xff]   ;;  %v3274_v57 = vld [vmem:[%s4790_s1 + $0x1a0] ss:$16 sps:$4 sm:$0xff]  }
  0x14   :  { %1247 = vmatprep.subr.bf16.mxu0 %v3222_v20  ;;  %1419 = vmatprep.subr.bf16.mxu1 %v3224_v21  ;;  %v3275_v58 = vld [vmem:[%s4790_s1 + $0x1a8] ss:$16 sps:$4 sm:$0xff]   ;;  %v3276_v59 = vld [vmem:[%s4790_s1 + $0x1c4] ss:$16 sps:$4 sm:$0xff]   ;;  %v3278_v60 = vld [vmem:[%s4790_s1 + $0x1cc] ss:$16 sps:$4 sm:$0xff]  }
  0x15   :  { %1269 = vmatprep.mubr.bf16.mxu0 %v51_v50  ;;  %1441 = vmatprep.mubr.bf16.mxu1 %v51_v50  ;;  %v3280_v61 = vld [vmem:[%s4790_s1 + $0x1c0] ss:$16 sps:$4 sm:$0xff]   ;;  %v3281_v62 = vld [vmem:[%s4790_s1 + $0x1c8] ss:$16 sps:$4 sm:$0xff]   ;;  %v3282_v63 = vld [vmem:[%s4790_s1 + $0x1e4] ss:$16 sps:$4 sm:$0xff]  }
  0x16   :  { %v3284_v0 = vld [vmem:[%s4790_s1 + $0x1ec] ss:$16 sps:$4 sm:$0xff]   ;;  %v3286_v1 = vld [vmem:[%s4790_s1 + $0x1e0] ss:$16 sps:$4 sm:$0xff]   ;;  %v3287_v2 = vld [vmem:[%s4790_s1 + $0x1e8] ss:$16 sps:$4 sm:$0xff]  }
  0x17   :  { %1248 = vmatpush1.bf16.msra.mxu0 %v3226_v22  ;;  %1420 = vmatpush1.bf16.msra.mxu1 %v3227_v23  ;;  %v3290_v3 = vld [vmem:[%s4790_s1 + $0x204] ss:$16 sps:$4 sm:$0xff]   ;;  %v43_v5 = vld [vmem:[%s4791_s0 + $0x38] sm:$0xff]  ;;  %v3288_v7 = vld [vmem:[%s4790_s1 + $0x200] ss:$16 sps:$4 sm:$0xff]  }
  0x18   :  { %1249 = vmatprep.subr.bf16.mxu0 %v3228_v24  ;;  %1421 = vmatprep.subr.bf16.mxu1 %v3230_v25  ;;  %v36_v4 = vld [vmem:[%s4791_s0] sm:$0xff]  ;;  %v3293_v6 = vld [vmem:[%s4790_s1 + $0x20c] ss:$16 sps:$4 sm:$0xff]   ;;  %v3291_v8 = vld [vmem:[%s4790_s1 + $0x208] ss:$16 sps:$4 sm:$0xff]  }
  0x19   :  { %v50_v9 = vpack.c.bf16 %v43_v5, %v36_v4  ;;  %v3296_v10 = vld [vmem:[%s4790_s1 + $0x224] ss:$16 sps:$4 sm:$0xff]   ;;  %v3299_v11 = vld [vmem:[%s4790_s1 + $0x22c] ss:$16 sps:$4 sm:$0xff]   ;;  %v3294_v12 = vld [vmem:[%s4790_s1 + $0x220] ss:$16 sps:$4 sm:$0xff]  }
  0x1a   :  { %v3297_v13 = vld [vmem:[%s4790_s1 + $0x228] ss:$16 sps:$4 sm:$0xff]   ;;  %v3302_v14 = vld [vmem:[%s4790_s1 + $0x244] ss:$16 sps:$4 sm:$0xff]   ;;  %v3305_v15 = vld [vmem:[%s4790_s1 + $0x24c] ss:$16 sps:$4 sm:$0xff]  }
  0x1b   :  { %1250 = vmatpush1.bf16.msra.mxu0 %v3232_v26  ;;  %1422 = vmatpush1.bf16.msra.mxu1 %v3233_v27  ;;  %v3300_v16 = vld [vmem:[%s4790_s1 + $0x240] ss:$16 sps:$4 sm:$0xff]   ;;  %v3303_v17 = vld [vmem:[%s4790_s1 + $0x248] ss:$16 sps:$4 sm:$0xff]   ;;  %v3308_v18 = vld [vmem:[%s4790_s1 + $0x264] ss:$16 sps:$4 sm:$0xff]  }
  0x1c   :  { %1251 = vmatprep.subr.bf16.mxu0 %v3234_v28  ;;  %1423 = vmatprep.subr.bf16.mxu1 %v3236_v29  ;;  %v3311_v19 = vld [vmem:[%s4790_s1 + $0x26c] ss:$16 sps:$4 sm:$0xff]   ;;  %v3306_v20 = vld [vmem:[%s4790_s1 + $0x260] ss:$16 sps:$4 sm:$0xff]   ;;  %v3309_v21 = vld [vmem:[%s4790_s1 + $0x268] ss:$16 sps:$4 sm:$0xff]  }
  0x1d   :  { %v3314_v22 = vld [vmem:[%s4790_s1 + $0x284] ss:$16 sps:$4 sm:$0xff]   ;;  %v3317_v23 = vld [vmem:[%s4790_s1 + $0x28c] ss:$16 sps:$4 sm:$0xff]   ;;  %v3312_v24 = vld [vmem:[%s4790_s1 + $0x280] ss:$16 sps:$4 sm:$0xff]  }
  0x1e   :  { %v3315_v25 = vld [vmem:[%s4790_s1 + $0x288] ss:$16 sps:$4 sm:$0xff]   ;;  %v3320_v26 = vld [vmem:[%s4790_s1 + $0x2a4] ss:$16 sps:$4 sm:$0xff]   ;;  %v3323_v27 = vld [vmem:[%s4790_s1 + $0x2ac] ss:$16 sps:$4 sm:$0xff]  }
  0x1f   :  { %1252 = vmatpush1.bf16.msra.mxu0 %v3238_v30  ;;  %1424 = vmatpush1.bf16.msra.mxu1 %v3239_v31  ;;  %v3318_v28 = vld [vmem:[%s4790_s1 + $0x2a0] ss:$16 sps:$4 sm:$0xff]   ;;  %v3321_v29 = vld [vmem:[%s4790_s1 + $0x2a8] ss:$16 sps:$4 sm:$0xff]   ;;  %v3326_v30 = vld [vmem:[%s4790_s1 + $0x2c4] ss:$16 sps:$4 sm:$0xff]  }
  0x20   :  { %1253 = vmatprep.subr.bf16.mxu0 %v3240_v32  ;;  %1425 = vmatprep.subr.bf16.mxu1 %v3242_v33  ;;  %v3329_v31 = vld [vmem:[%s4790_s1 + $0x2cc] ss:$16 sps:$4 sm:$0xff]   ;;  %v46_v33 = vld [vmem:[%s4791_s0 + $0x50] sm:$0xff]  ;;  %v3375_v4 = vld [vmem:[%s4790_s1 + $0x3c8] ss:$16 sps:$4 sm:$0xff]  }
  0x21   :  { %v39_v32 = vld [vmem:[%s4791_s0 + $0x18] sm:$0xff]  ;;  %v3342_v47 = vld [vmem:[%s4790_s1 + $0x320] ss:$16 sps:$4 sm:$0xff]   ;;  %v3380_v5 = vld [vmem:[%s4790_s1 + $0x3e4] ss:$16 sps:$4 sm:$0xff]  }
  0x22   :  { %v3347_v46 = vld [vmem:[%s4790_s1 + $0x32c] ss:$16 sps:$4 sm:$0xff]  }
  0x23   :  { %1254 = vmatpush1.bf16.msra.mxu0 %v3244_v34  ;;  %1426 = vmatpush1.bf16.msra.mxu1 %v3245_v35  ;;  %v3324_v34 = vld [vmem:[%s4790_s1 + $0x2c0] ss:$16 sps:$4 sm:$0xff]   ;;  %v3327_v35 = vld [vmem:[%s4790_s1 + $0x2c8] ss:$16 sps:$4 sm:$0xff]   ;;  %v3353_v50 = vld [vmem:[%s4790_s1 + $0x34c] ss:$16 sps:$4 sm:$0xff]  }
  0x24   :  { %1255 = vmatprep.subr.bf16.mxu0 %v3246_v36  ;;  %1427 = vmatprep.subr.bf16.mxu1 %v3248_v37  ;;  %v53_v36 = vpack.c.bf16 %v46_v33, %v39_v32  ;;  %v3332_v37 = vld [vmem:[%s4790_s1 + $0x2e4] ss:$16 sps:$4 sm:$0xff]   ;;  %v3413_v32 = vld [vmem:[%s4790_s1 + $0x48c] ss:$16 sps:$4 sm:$0xff]   ;;  %v3408_v33 = vld [vmem:[%s4790_s1 + $0x480] ss:$16 sps:$4 sm:$0xff]  }
  0x27   :  { %1256 = vmatpush1.bf16.msra.mxu0 %v3250_v38  ;;  %1428 = vmatpush1.bf16.msra.mxu1 %v3251_v39  ;;  %v3335_v38 = vld [vmem:[%s4790_s1 + $0x2ec] ss:$16 sps:$4 sm:$0xff]   ;;  %v3330_v39 = vld [vmem:[%s4790_s1 + $0x2e0] ss:$16 sps:$4 sm:$0xff]  }
  0x28   :  { %1257 = vmatprep.subr.bf16.mxu0 %v3252_v40  ;;  %1429 = vmatprep.subr.bf16.mxu1 %v3254_v41  ;;  %v3333_v40 = vld [vmem:[%s4790_s1 + $0x2e8] ss:$16 sps:$4 sm:$0xff]   ;;  %v3338_v41 = vld [vmem:[%s4790_s1 + $0x304] ss:$16 sps:$4 sm:$0xff]  }
  0x2b   :  { %1258 = vmatpush1.bf16.msra.mxu0 %v3256_v42  ;;  %1430 = vmatpush1.bf16.msra.mxu1 %v3257_v43  ;;  %v3341_v42 = vld [vmem:[%s4790_s1 + $0x30c] ss:$16 sps:$4 sm:$0xff]   ;;  %v3336_v43 = vld [vmem:[%s4790_s1 + $0x300] ss:$16 sps:$4 sm:$0xff]  }
  0x2c   :  { %1259 = vmatprep.subr.bf16.mxu0 %v3258_v44  ;;  %1431 = vmatprep.subr.bf16.mxu1 %v3260_v45  ;;  %v3339_v44 = vld [vmem:[%s4790_s1 + $0x308] ss:$16 sps:$4 sm:$0xff]   ;;  %v3344_v45 = vld [vmem:[%s4790_s1 + $0x324] ss:$16 sps:$4 sm:$0xff]  }
  0x2f   :  { %1260 = vmatpush1.bf16.msra.mxu0 %v3262_v48  ;;  %1432 = vmatpush1.bf16.msra.mxu1 %v3263_v49  ;;  %v3345_v48 = vld [vmem:[%s4790_s1 + $0x328] ss:$16 sps:$4 sm:$0xff]   ;;  %v3350_v49 = vld [vmem:[%s4790_s1 + $0x344] ss:$16 sps:$4 sm:$0xff]  }
  0x30   :  { %1261 = vmatprep.subr.bf16.mxu0 %v3264_v51  ;;  %1433 = vmatprep.subr.bf16.mxu1 %v3266_v52  ;;  %v3348_v51 = vld [vmem:[%s4790_s1 + $0x340] ss:$16 sps:$4 sm:$0xff]   ;;  %v3351_v52 = vld [vmem:[%s4790_s1 + $0x348] ss:$16 sps:$4 sm:$0xff]  }
  0x33   :  { %1262 = vmatpush1.bf16.msra.mxu0 %v3268_v53  ;;  %1434 = vmatpush1.bf16.msra.mxu1 %v3269_v54  ;;  %v3356_v53 = vld [vmem:[%s4790_s1 + $0x364] ss:$16 sps:$4 sm:$0xff]   ;;  %v3359_v54 = vld [vmem:[%s4790_s1 + $0x36c] ss:$16 sps:$4 sm:$0xff]  }
  0x34   :  { %1263 = vmatprep.subr.bf16.mxu0 %v3270_v55  ;;  %1435 = vmatprep.subr.bf16.mxu1 %v3272_v56  ;;  %v3354_v55 = vld [vmem:[%s4790_s1 + $0x360] ss:$16 sps:$4 sm:$0xff]   ;;  %v3357_v56 = vld [vmem:[%s4790_s1 + $0x368] ss:$16 sps:$4 sm:$0xff]  }
  0x37   :  { %1264 = vmatpush1.bf16.msra.mxu0 %v3274_v57  ;;  %1436 = vmatpush1.bf16.msra.mxu1 %v3275_v58  ;;  %v3362_v57 = vld [vmem:[%s4790_s1 + $0x384] ss:$16 sps:$4 sm:$0xff]   ;;  %v3365_v58 = vld [vmem:[%s4790_s1 + $0x38c] ss:$16 sps:$4 sm:$0xff]  }
  0x38   :  { %1265 = vmatprep.subr.bf16.mxu0 %v3276_v59  ;;  %1437 = vmatprep.subr.bf16.mxu1 %v3278_v60  ;;  %v3360_v59 = vld [vmem:[%s4790_s1 + $0x380] ss:$16 sps:$4 sm:$0xff]   ;;  %v3363_v60 = vld [vmem:[%s4790_s1 + $0x388] ss:$16 sps:$4 sm:$0xff]  }
  0x3b   :  { %1266 = vmatpush1.bf16.msra.mxu0 %v3280_v61  ;;  %1438 = vmatpush1.bf16.msra.mxu1 %v3281_v62  ;;  %v3368_v61 = vld [vmem:[%s4790_s1 + $0x3a4] ss:$16 sps:$4 sm:$0xff]   ;;  %v3371_v62 = vld [vmem:[%s4790_s1 + $0x3ac] ss:$16 sps:$4 sm:$0xff]  }
  0x3c   :  { %1267 = vmatprep.subr.bf16.mxu0 %v3282_v63  ;;  %1439 = vmatprep.subr.bf16.mxu1 %v3284_v0  ;;  %v3366_v63 = vld [vmem:[%s4790_s1 + $0x3a0] ss:$16 sps:$4 sm:$0xff]   ;;  %v3369_v0 = vld [vmem:[%s4790_s1 + $0x3a8] ss:$16 sps:$4 sm:$0xff]  }
  0x3f   :  { %1268 = vmatpush1.bf16.msra.mxu0 %v3286_v1  ;;  %1440 = vmatpush1.bf16.msra.mxu1 %v3287_v2  ;;  %v3374_v1 = vld [vmem:[%s4790_s1 + $0x3c4] ss:$16 sps:$4 sm:$0xff]   ;;  %v3377_v2 = vld [vmem:[%s4790_s1 + $0x3cc] ss:$16 sps:$4 sm:$0xff]  }
  0x40   :  { %1280 = vmatprep.subr.bf16.mxu0 %v3290_v3  ;;  %1452 = vmatprep.subr.bf16.mxu1 %v3293_v6  ;;  %v3372_v3 = vld [vmem:[%s4790_s1 + $0x3c0] ss:$16 sps:$4 sm:$0xff]   ;;  %v3383_v6 = vld [vmem:[%s4790_s1 + $0x3ec] ss:$16 sps:$4 sm:$0xff]  }
  0x42   :  { %1270 = vmatmul.mubr.bf16.vlgmr.msra.gmra.mrb[0].mxu0 %v50_v9  ;;  %1442 = vmatmul.mubr.bf16.vlgmr.msra.gmra.mrb[0].mxu1 %v50_v9  ;;  %v3386_v9 = vld [vmem:[%s4790_s1 + $0x404] ss:$16 sps:$4 sm:$0xff]  }
  0x43   :  { %1281 = vmatpush1.bf16.msra.mxu0 %v3288_v7  ;;  %1453 = vmatpush1.bf16.msra.mxu1 %v3291_v8  ;;  %v3378_v7 = vld [vmem:[%s4790_s1 + $0x3e0] ss:$16 sps:$4 sm:$0xff]   ;;  %v3381_v8 = vld [vmem:[%s4790_s1 + $0x3e8] ss:$16 sps:$4 sm:$0xff]  }
  0x44   :  { %1282 = vmatprep.subr.bf16.mxu0 %v3296_v10  ;;  %1454 = vmatprep.subr.bf16.mxu1 %v3299_v11  ;;  %v38_v10 = vld [vmem:[%s4791_s0 + $0x10] sm:$0xff]  ;;  %v45_v11 = vld [vmem:[%s4791_s0 + $0x48] sm:$0xff] }
  0x45   :  { %1312 = vmatprep.mubr.bf16.mxu0 %v53_v36  ;;  %1484 = vmatprep.mubr.bf16.mxu1 %v53_v36  ;;  %v3419_v36 = vld [vmem:[%s4790_s1 + $0x4ac] ss:$16 sps:$4 sm:$0xff]  }
  0x47   :  { %1283 = vmatpush1.bf16.msra.mxu0 %v3294_v12  ;;  %1455 = vmatpush1.bf16.msra.mxu1 %v3297_v13  ;;  %v3389_v12 = vld [vmem:[%s4790_s1 + $0x40c] ss:$16 sps:$4 sm:$0xff]   ;;  %v3384_v13 = vld [vmem:[%s4790_s1 + $0x400] ss:$16 sps:$4 sm:$0xff]  }
  0x48   :  { %1284 = vmatprep.subr.bf16.mxu0 %v3302_v14  ;;  %1456 = vmatprep.subr.bf16.mxu1 %v3305_v15  ;;  %v3387_v14 = vld [vmem:[%s4790_s1 + $0x408] ss:$16 sps:$4 sm:$0xff]   ;;  %v52_v15 = vpack.c.bf16 %v45_v11, %v38_v10  ;;  %v3476_v11 = vld [vmem:[%s4790_s1 + $0x5e4] ss:$16 sps:$4 sm:$0xff]  }
  0x49   :  { %v3471_v10 = vld [vmem:[%s4790_s1 + $0x5c8] ss:$16 sps:$4 sm:$0xff]  }
  0x4b   :  { %1285 = vmatpush1.bf16.msra.mxu0 %v3300_v16  ;;  %1457 = vmatpush1.bf16.msra.mxu1 %v3303_v17  ;;  %v3392_v16 = vld [vmem:[%s4790_s1 + $0x424] ss:$16 sps:$4 sm:$0xff]   ;;  %v3395_v17 = vld [vmem:[%s4790_s1 + $0x42c] ss:$16 sps:$4 sm:$0xff]  }
  0x4c   :  { %1286 = vmatprep.subr.bf16.mxu0 %v3308_v18  ;;  %1458 = vmatprep.subr.bf16.mxu1 %v3311_v19  ;;  %v41_v18 = vld [vmem:[%s4791_s0 + $0x28] sm:$0xff]  ;;  %v3390_v19 = vld [vmem:[%s4790_s1 + $0x420] ss:$16 sps:$4 sm:$0xff]  }
  0x4f   :  { %1287 = vmatpush1.bf16.msra.mxu0 %v3306_v20  ;;  %1459 = vmatpush1.bf16.msra.mxu1 %v3309_v21  ;;  %v3393_v20 = vld [vmem:[%s4790_s1 + $0x428] ss:$16 sps:$4 sm:$0xff]   ;;  %v48_v21 = vld [vmem:[%s4791_s0 + $0x60] sm:$0xff] }
  0x50   :  { %1288 = vmatprep.subr.bf16.mxu0 %v3314_v22  ;;  %1460 = vmatprep.subr.bf16.mxu1 %v3317_v23  ;;  %v3398_v22 = vld [vmem:[%s4790_s1 + $0x444] ss:$16 sps:$4 sm:$0xff]   ;;  %v55_v23 = vpack.c.bf16 %v48_v21, %v41_v18  ;;  %v3485_v18 = vld [vmem:[%s4790_s1 + $0x60c] ss:$16 sps:$4 sm:$0xff]   ;;  %v3483_v21 = vld [vmem:[%s4790_s1 + $0x608] ss:$16 sps:$4 sm:$0xff]  }
  0x53   :  { %1289 = vmatpush1.bf16.msra.mxu0 %v3312_v24  ;;  %1461 = vmatpush1.bf16.msra.mxu1 %v3315_v25  ;;  %v3401_v24 = vld [vmem:[%s4790_s1 + $0x44c] ss:$16 sps:$4 sm:$0xff]   ;;  %v3396_v25 = vld [vmem:[%s4790_s1 + $0x440] ss:$16 sps:$4 sm:$0xff]  }
  0x54   :  { %1290 = vmatprep.subr.bf16.mxu0 %v3320_v26  ;;  %1462 = vmatprep.subr.bf16.mxu1 %v3323_v27  ;;  %v3399_v26 = vld [vmem:[%s4790_s1 + $0x448] ss:$16 sps:$4 sm:$0xff]   ;;  %v3404_v27 = vld [vmem:[%s4790_s1 + $0x464] ss:$16 sps:$4 sm:$0xff]  }
  0x57   :  { %1291 = vmatpush1.bf16.msra.mxu0 %v3318_v28  ;;  %1463 = vmatpush1.bf16.msra.mxu1 %v3321_v29  ;;  %v3407_v28 = vld [vmem:[%s4790_s1 + $0x46c] ss:$16 sps:$4 sm:$0xff]   ;;  %v3402_v29 = vld [vmem:[%s4790_s1 + $0x460] ss:$16 sps:$4 sm:$0xff]  }
  0x58   :  { %1292 = vmatprep.subr.bf16.mxu0 %v3326_v30  ;;  %1464 = vmatprep.subr.bf16.mxu1 %v3329_v31  ;;  %v3405_v30 = vld [vmem:[%s4790_s1 + $0x468] ss:$16 sps:$4 sm:$0xff]   ;;  %v3410_v31 = vld [vmem:[%s4790_s1 + $0x484] ss:$16 sps:$4 sm:$0xff]  }
  0x5b   :  { %1293 = vmatpush1.bf16.msra.mxu0 %v3324_v34  ;;  %1465 = vmatpush1.bf16.msra.mxu1 %v3327_v35  ;;  %v3411_v34 = vld [vmem:[%s4790_s1 + $0x488] ss:$16 sps:$4 sm:$0xff]   ;;  %v3416_v35 = vld [vmem:[%s4790_s1 + $0x4a4] ss:$16 sps:$4 sm:$0xff]  }
  0x5c   :  { %1294 = vmatprep.subr.bf16.mxu0 %v3332_v37  ;;  %1466 = vmatprep.subr.bf16.mxu1 %v3335_v38  ;;  %v3414_v37 = vld [vmem:[%s4790_s1 + $0x4a0] ss:$16 sps:$4 sm:$0xff]   ;;  %v3417_v38 = vld [vmem:[%s4790_s1 + $0x4a8] ss:$16 sps:$4 sm:$0xff]  }
  0x5f   :  { %1295 = vmatpush1.bf16.msra.mxu0 %v3330_v39  ;;  %1467 = vmatpush1.bf16.msra.mxu1 %v3333_v40  ;;  %v3422_v39 = vld [vmem:[%s4790_s1 + $0x4c4] ss:$16 sps:$4 sm:$0xff]   ;;  %v3425_v40 = vld [vmem:[%s4790_s1 + $0x4cc] ss:$16 sps:$4 sm:$0xff]  }
  0x60   :  { %1296 = vmatprep.subr.bf16.mxu0 %v3338_v41  ;;  %1468 = vmatprep.subr.bf16.mxu1 %v3341_v42  ;;  %v3420_v41 = vld [vmem:[%s4790_s1 + $0x4c0] ss:$16 sps:$4 sm:$0xff]   ;;  %v3423_v42 = vld [vmem:[%s4790_s1 + $0x4c8] ss:$16 sps:$4 sm:$0xff]  }
  0x63   :  { %1297 = vmatpush1.bf16.msra.mxu0 %v3336_v43  ;;  %1469 = vmatpush1.bf16.msra.mxu1 %v3339_v44  ;;  %v3428_v43 = vld [vmem:[%s4790_s1 + $0x4e4] ss:$16 sps:$4 sm:$0xff]   ;;  %v3431_v44 = vld [vmem:[%s4790_s1 + $0x4ec] ss:$16 sps:$4 sm:$0xff]  }
  0x64   :  { %1298 = vmatprep.subr.bf16.mxu0 %v3344_v45  ;;  %1470 = vmatprep.subr.bf16.mxu1 %v3347_v46  ;;  %v3426_v45 = vld [vmem:[%s4790_s1 + $0x4e0] ss:$16 sps:$4 sm:$0xff]   ;;  %v3429_v46 = vld [vmem:[%s4790_s1 + $0x4e8] ss:$16 sps:$4 sm:$0xff]  }
  0x67   :  { %1299 = vmatpush1.bf16.msra.mxu0 %v3342_v47  ;;  %1471 = vmatpush1.bf16.msra.mxu1 %v3345_v48  ;;  %v3434_v47 = vld [vmem:[%s4790_s1 + $0x504] ss:$16 sps:$4 sm:$0xff]   ;;  %v3437_v48 = vld [vmem:[%s4790_s1 + $0x50c] ss:$16 sps:$4 sm:$0xff]  }
  0x68   :  { %1300 = vmatprep.subr.bf16.mxu0 %v3350_v49  ;;  %1472 = vmatprep.subr.bf16.mxu1 %v3353_v50  ;;  %v3432_v49 = vld [vmem:[%s4790_s1 + $0x500] ss:$16 sps:$4 sm:$0xff]   ;;  %v3435_v50 = vld [vmem:[%s4790_s1 + $0x508] ss:$16 sps:$4 sm:$0xff]  }
  0x6b   :  { %1301 = vmatpush1.bf16.msra.mxu0 %v3348_v51  ;;  %1473 = vmatpush1.bf16.msra.mxu1 %v3351_v52  ;;  %v3440_v51 = vld [vmem:[%s4790_s1 + $0x524] ss:$16 sps:$4 sm:$0xff]   ;;  %v3443_v52 = vld [vmem:[%s4790_s1 + $0x52c] ss:$16 sps:$4 sm:$0xff]  }
  0x6c   :  { %1302 = vmatprep.subr.bf16.mxu0 %v3356_v53  ;;  %1474 = vmatprep.subr.bf16.mxu1 %v3359_v54  ;;  %v3438_v53 = vld [vmem:[%s4790_s1 + $0x520] ss:$16 sps:$4 sm:$0xff]   ;;  %v3441_v54 = vld [vmem:[%s4790_s1 + $0x528] ss:$16 sps:$4 sm:$0xff]  }
  0x6f   :  { %1303 = vmatpush1.bf16.msra.mxu0 %v3354_v55  ;;  %1475 = vmatpush1.bf16.msra.mxu1 %v3357_v56  ;;  %v3446_v55 = vld [vmem:[%s4790_s1 + $0x544] ss:$16 sps:$4 sm:$0xff]   ;;  %v3449_v56 = vld [vmem:[%s4790_s1 + $0x54c] ss:$16 sps:$4 sm:$0xff]  }
  0x70   :  { %1304 = vmatprep.subr.bf16.mxu0 %v3362_v57  ;;  %1476 = vmatprep.subr.bf16.mxu1 %v3365_v58  ;;  %v3444_v57 = vld [vmem:[%s4790_s1 + $0x540] ss:$16 sps:$4 sm:$0xff]   ;;  %v3447_v58 = vld [vmem:[%s4790_s1 + $0x548] ss:$16 sps:$4 sm:$0xff]  }
  0x73   :  { %1305 = vmatpush1.bf16.msra.mxu0 %v3360_v59  ;;  %1477 = vmatpush1.bf16.msra.mxu1 %v3363_v60  ;;  %v3452_v59 = vld [vmem:[%s4790_s1 + $0x564] ss:$16 sps:$4 sm:$0xff]   ;;  %v3455_v60 = vld [vmem:[%s4790_s1 + $0x56c] ss:$16 sps:$4 sm:$0xff]  }
  0x74   :  { %1306 = vmatprep.subr.bf16.mxu0 %v3368_v61  ;;  %1478 = vmatprep.subr.bf16.mxu1 %v3371_v62  ;;  %v3450_v61 = vld [vmem:[%s4790_s1 + $0x560] ss:$16 sps:$4 sm:$0xff]   ;;  %v3453_v62 = vld [vmem:[%s4790_s1 + $0x568] ss:$16 sps:$4 sm:$0xff]  }
  0x77   :  { %1307 = vmatpush1.bf16.msra.mxu0 %v3366_v63  ;;  %1479 = vmatpush1.bf16.msra.mxu1 %v3369_v0  ;;  %v3458_v63 = vld [vmem:[%s4790_s1 + $0x584] ss:$16 sps:$4 sm:$0xff]   ;;  %v3461_v0 = vld [vmem:[%s4790_s1 + $0x58c] ss:$16 sps:$4 sm:$0xff]  }
  0x78   :  { %1308 = vmatprep.subr.bf16.mxu0 %v3374_v1  ;;  %1480 = vmatprep.subr.bf16.mxu1 %v3377_v2  ;;  %v3456_v1 = vld [vmem:[%s4790_s1 + $0x580] ss:$16 sps:$4 sm:$0xff]   ;;  %v3459_v2 = vld [vmem:[%s4790_s1 + $0x588] ss:$16 sps:$4 sm:$0xff]  }
  0x7b   :  { %1309 = vmatpush1.bf16.msra.mxu0 %v3372_v3  ;;  %1481 = vmatpush1.bf16.msra.mxu1 %v3375_v4  ;;  %v3464_v3 = vld [vmem:[%s4790_s1 + $0x5a4] ss:$16 sps:$4 sm:$0xff]   ;;  %v3467_v4 = vld [vmem:[%s4790_s1 + $0x5ac] ss:$16 sps:$4 sm:$0xff]  }
  0x7c   :  { %1310 = vmatprep.subr.bf16.mxu0 %v3380_v5  ;;  %1482 = vmatprep.subr.bf16.mxu1 %v3383_v6  ;;  %v3462_v5 = vld [vmem:[%s4790_s1 + $0x5a0] ss:$16 sps:$4 sm:$0xff]   ;;  %v3465_v6 = vld [vmem:[%s4790_s1 + $0x5a8] ss:$16 sps:$4 sm:$0xff]  }
  0x7f   :  { %1311 = vmatpush1.bf16.msra.mxu0 %v3378_v7  ;;  %1483 = vmatpush1.bf16.msra.mxu1 %v3381_v8  ;;  %v3470_v7 = vld [vmem:[%s4790_s1 + $0x5c4] ss:$16 sps:$4 sm:$0xff]   ;;  %v3473_v8 = vld [vmem:[%s4790_s1 + $0x5cc] ss:$16 sps:$4 sm:$0xff]  }
  0x80   :  { %1323 = vmatprep.subr.bf16.mxu0 %v3386_v9  ;;  %1495 = vmatprep.subr.bf16.mxu1 %v3389_v12  ;;  %v3468_v9 = vld [vmem:[%s4790_s1 + $0x5c0] ss:$16 sps:$4 sm:$0xff]   ;;  %v3479_v12 = vld [vmem:[%s4790_s1 + $0x5ec] ss:$16 sps:$4 sm:$0xff]  }
  0x82   :  { %1313 = vmatmul.mubr.bf16.vlgmr.msra.gmra.mrb[0].mxu0 %v52_v15  ;;  %1485 = vmatmul.mubr.bf16.vlgmr.msra.gmra.mrb[0].mxu1 %v52_v15  ;;  %v40_v15 = vld [vmem:[%s4791_s0 + $0x20] sm:$0xff] }
  0x83   :  { %1324 = vmatpush1.bf16.msra.mxu0 %v3384_v13  ;;  %1496 = vmatpush1.bf16.msra.mxu1 %v3387_v14  ;;  %v3474_v13 = vld [vmem:[%s4790_s1 + $0x5e0] ss:$16 sps:$4 sm:$0xff]   ;;  %v3477_v14 = vld [vmem:[%s4790_s1 + $0x5e8] ss:$16 sps:$4 sm:$0xff]  }
  0x84   :  { %1325 = vmatprep.subr.bf16.mxu0 %v3392_v16  ;;  %1497 = vmatprep.subr.bf16.mxu1 %v3395_v17  ;;  %v47_v16 = vld [vmem:[%s4791_s0 + $0x58] sm:$0xff]  ;;  %v3482_v17 = vld [vmem:[%s4790_s1 + $0x604] ss:$16 sps:$4 sm:$0xff]  }
  0x85   :  { %1355 = vmatprep.mubr.bf16.mxu0 %v55_v23  ;;  %1527 = vmatprep.mubr.bf16.mxu1 %v55_v23  ;;  %v3491_v23 = vld [vmem:[%s4792_s4 + $0xc] ss:$16 sps:$4 sm:$0xff]  }
  0x87   :  { %1326 = vmatpush1.bf16.msra.mxu0 %v3390_v19  ;;  %1498 = vmatpush1.bf16.msra.mxu1 %v3393_v20  ;;  %v54_v19 = vpack.c.bf16 %v47_v16, %v40_v15  ;;  %v3480_v20 = vld [vmem:[%s4790_s1 + $0x600] ss:$16 sps:$4 sm:$0xff]   ;;  %v3569_v15 = vld [vmem:[%s4792_s4 + $0x1ac] ss:$16 sps:$4 sm:$0xff]  }
  0x88   :  { %1327 = vmatprep.subr.bf16.mxu0 %v3398_v22  ;;  %1499 = vmatprep.subr.bf16.mxu1 %v3401_v24  ;;  %v3488_v22 = vld [vmem:[%s4792_s4 + $0x4] ss:$16 sps:$4 sm:$0xff]   ;;  %v3661_v24 = vmov 0   ;;  %v3564_v16 = vld [vmem:[%s4792_s4 + $0x1a0] ss:$16 sps:$4 sm:$0xff]  }
  0x8b   :  { %1328 = vmatpush1.bf16.msra.mxu0 %v3396_v25  ;;  %1500 = vmatpush1.bf16.msra.mxu1 %v3399_v26  ;;  %v42_v25 = vld [vmem:[%s4791_s0 + $0x30] sm:$0xff]  ;;  %v49_v26 = vld [vmem:[%s4791_s0 + $0x68] sm:$0xff] }
  0x8c   :  { %1329 = vmatprep.subr.bf16.mxu0 %v3404_v27  ;;  %1501 = vmatprep.subr.bf16.mxu1 %v3407_v28  ;;  %v56_v27 = vpack.c.bf16 %v49_v26, %v42_v25  ;;  %v3486_v28 = vld [vmem:[%s4792_s4] ss:$16 sps:$4 sm:$0xff]   ;;  %v3579_v26 = vld [vmem:[%s4792_s4 + $0x1e8] ss:$16 sps:$4 sm:$0xff]  }
  0x8d   :  { %v3576_v25 = vld [vmem:[%s4792_s4 + $0x1e0] ss:$16 sps:$4 sm:$0xff]  }
  0x8f   :  { %1330 = vmatpush1.bf16.msra.mxu0 %v3402_v29  ;;  %1502 = vmatpush1.bf16.msra.mxu1 %v3405_v30  ;;  %v3489_v29 = vld [vmem:[%s4792_s4 + $0x8] ss:$16 sps:$4 sm:$0xff]   ;;  %v3494_v30 = vld [vmem:[%s4792_s4 + $0x24] ss:$16 sps:$4 sm:$0xff]  }
  0x90   :  { %1331 = vmatprep.subr.bf16.mxu0 %v3410_v31  ;;  %1503 = vmatprep.subr.bf16.mxu1 %v3413_v32  ;;  %v3497_v31 = vld [vmem:[%s4792_s4 + $0x2c] ss:$16 sps:$4 sm:$0xff]   ;;  %v3492_v32 = vld [vmem:[%s4792_s4 + $0x20] ss:$16 sps:$4 sm:$0xff]  }
  0x93   :  { %1332 = vmatpush1.bf16.msra.mxu0 %v3408_v33  ;;  %1504 = vmatpush1.bf16.msra.mxu1 %v3411_v34  ;;  %v3495_v33 = vld [vmem:[%s4792_s4 + $0x28] ss:$16 sps:$4 sm:$0xff]   ;;  %v3500_v34 = vld [vmem:[%s4792_s4 + $0x44] ss:$16 sps:$4 sm:$0xff]  }
  0x94   :  { %1333 = vmatprep.subr.bf16.mxu0 %v3416_v35  ;;  %1505 = vmatprep.subr.bf16.mxu1 %v3419_v36  ;;  %v3503_v35 = vld [vmem:[%s4792_s4 + $0x4c] ss:$16 sps:$4 sm:$0xff]   ;;  %v3498_v36 = vld [vmem:[%s4792_s4 + $0x40] ss:$16 sps:$4 sm:$0xff]  }
  0x97   :  { %1334 = vmatpush1.bf16.msra.mxu0 %v3414_v37  ;;  %1506 = vmatpush1.bf16.msra.mxu1 %v3417_v38  ;;  %v3501_v37 = vld [vmem:[%s4792_s4 + $0x48] ss:$16 sps:$4 sm:$0xff]   ;;  %v3506_v38 = vld [vmem:[%s4792_s4 + $0x64] ss:$16 sps:$4 sm:$0xff]  }
  0x98   :  { %1335 = vmatprep.subr.bf16.mxu0 %v3422_v39  ;;  %1507 = vmatprep.subr.bf16.mxu1 %v3425_v40  ;;  %v3509_v39 = vld [vmem:[%s4792_s4 + $0x6c] ss:$16 sps:$4 sm:$0xff]   ;;  %v3504_v40 = vld [vmem:[%s4792_s4 + $0x60] ss:$16 sps:$4 sm:$0xff]  }
  0x9b   :  { %1336 = vmatpush1.bf16.msra.mxu0 %v3420_v41  ;;  %1508 = vmatpush1.bf16.msra.mxu1 %v3423_v42  ;;  %v3507_v41 = vld [vmem:[%s4792_s4 + $0x68] ss:$16 sps:$4 sm:$0xff]   ;;  %v3512_v42 = vld [vmem:[%s4792_s4 + $0x84] ss:$16 sps:$4 sm:$0xff]  }
  0x9c   :  { %1337 = vmatprep.subr.bf16.mxu0 %v3428_v43  ;;  %1509 = vmatprep.subr.bf16.mxu1 %v3431_v44  ;;  %v3515_v43 = vld [vmem:[%s4792_s4 + $0x8c] ss:$16 sps:$4 sm:$0xff]   ;;  %v3510_v44 = vld [vmem:[%s4792_s4 + $0x80] ss:$16 sps:$4 sm:$0xff]  }
  0x9f   :  { %1338 = vmatpush1.bf16.msra.mxu0 %v3426_v45  ;;  %1510 = vmatpush1.bf16.msra.mxu1 %v3429_v46  ;;  %v3513_v45 = vld [vmem:[%s4792_s4 + $0x88] ss:$16 sps:$4 sm:$0xff]   ;;  %v3518_v46 = vld [vmem:[%s4792_s4 + $0xa4] ss:$16 sps:$4 sm:$0xff]  }
  0xa0   :  { %1339 = vmatprep.subr.bf16.mxu0 %v3434_v47  ;;  %1511 = vmatprep.subr.bf16.mxu1 %v3437_v48  ;;  %v3521_v47 = vld [vmem:[%s4792_s4 + $0xac] ss:$16 sps:$4 sm:$0xff]   ;;  %v3516_v48 = vld [vmem:[%s4792_s4 + $0xa0] ss:$16 sps:$4 sm:$0xff]  }
  0xa3   :  { %1340 = vmatpush1.bf16.msra.mxu0 %v3432_v49  ;;  %1512 = vmatpush1.bf16.msra.mxu1 %v3435_v50  ;;  %v3519_v49 = vld [vmem:[%s4792_s4 + $0xa8] ss:$16 sps:$4 sm:$0xff]   ;;  %v3524_v50 = vld [vmem:[%s4792_s4 + $0xc4] ss:$16 sps:$4 sm:$0xff]  }
  0xa4   :  { %1341 = vmatprep.subr.bf16.mxu0 %v3440_v51  ;;  %1513 = vmatprep.subr.bf16.mxu1 %v3443_v52  ;;  %v3527_v51 = vld [vmem:[%s4792_s4 + $0xcc] ss:$16 sps:$4 sm:$0xff]   ;;  %v3522_v52 = vld [vmem:[%s4792_s4 + $0xc0] ss:$16 sps:$4 sm:$0xff]  }
  0xa7   :  { %1342 = vmatpush1.bf16.msra.mxu0 %v3438_v53  ;;  %1514 = vmatpush1.bf16.msra.mxu1 %v3441_v54  ;;  %v3525_v53 = vld [vmem:[%s4792_s4 + $0xc8] ss:$16 sps:$4 sm:$0xff]   ;;  %v3530_v54 = vld [vmem:[%s4792_s4 + $0xe4] ss:$16 sps:$4 sm:$0xff]  }
  0xa8   :  { %1343 = vmatprep.subr.bf16.mxu0 %v3446_v55  ;;  %1515 = vmatprep.subr.bf16.mxu1 %v3449_v56  ;;  %v3533_v55 = vld [vmem:[%s4792_s4 + $0xec] ss:$16 sps:$4 sm:$0xff]   ;;  %v3528_v56 = vld [vmem:[%s4792_s4 + $0xe0] ss:$16 sps:$4 sm:$0xff]  }
  0xab   :  { %1344 = vmatpush1.bf16.msra.mxu0 %v3444_v57  ;;  %1516 = vmatpush1.bf16.msra.mxu1 %v3447_v58  ;;  %v3531_v57 = vld [vmem:[%s4792_s4 + $0xe8] ss:$16 sps:$4 sm:$0xff]   ;;  %v3536_v58 = vld [vmem:[%s4792_s4 + $0x104] ss:$16 sps:$4 sm:$0xff]  }
  0xac   :  { %1345 = vmatprep.subr.bf16.mxu0 %v3452_v59  ;;  %1517 = vmatprep.subr.bf16.mxu1 %v3455_v60  ;;  %v3539_v59 = vld [vmem:[%s4792_s4 + $0x10c] ss:$16 sps:$4 sm:$0xff]   ;;  %v3534_v60 = vld [vmem:[%s4792_s4 + $0x100] ss:$16 sps:$4 sm:$0xff]  }
  0xaf   :  { %1346 = vmatpush1.bf16.msra.mxu0 %v3450_v61  ;;  %1518 = vmatpush1.bf16.msra.mxu1 %v3453_v62  ;;  %v3537_v61 = vld [vmem:[%s4792_s4 + $0x108] ss:$16 sps:$4 sm:$0xff]   ;;  %v3542_v62 = vld [vmem:[%s4792_s4 + $0x124] ss:$16 sps:$4 sm:$0xff]  }
  0xb0   :  { %1347 = vmatprep.subr.bf16.mxu0 %v3458_v63  ;;  %1519 = vmatprep.subr.bf16.mxu1 %v3461_v0  ;;  %v3545_v63 = vld [vmem:[%s4792_s4 + $0x12c] ss:$16 sps:$4 sm:$0xff]   ;;  %v3540_v0 = vld [vmem:[%s4792_s4 + $0x120] ss:$16 sps:$4 sm:$0xff]  }
  0xb3   :  { %1348 = vmatpush1.bf16.msra.mxu0 %v3456_v1  ;;  %1520 = vmatpush1.bf16.msra.mxu1 %v3459_v2  ;;  %v3543_v1 = vld [vmem:[%s4792_s4 + $0x128] ss:$16 sps:$4 sm:$0xff]   ;;  %v3548_v2 = vld [vmem:[%s4792_s4 + $0x144] ss:$16 sps:$4 sm:$0xff]  }
  0xb4   :  { %1349 = vmatprep.subr.bf16.mxu0 %v3464_v3  ;;  %1521 = vmatprep.subr.bf16.mxu1 %v3467_v4  ;;  %v3551_v3 = vld [vmem:[%s4792_s4 + $0x14c] ss:$16 sps:$4 sm:$0xff]   ;;  %v3546_v4 = vld [vmem:[%s4792_s4 + $0x140] ss:$16 sps:$4 sm:$0xff]  }
  0xb7   :  { %1350 = vmatpush1.bf16.msra.mxu0 %v3462_v5  ;;  %1522 = vmatpush1.bf16.msra.mxu1 %v3465_v6  ;;  %v3549_v5 = vld [vmem:[%s4792_s4 + $0x148] ss:$16 sps:$4 sm:$0xff]   ;;  %v3554_v6 = vld [vmem:[%s4792_s4 + $0x164] ss:$16 sps:$4 sm:$0xff]  }
  0xb8   :  { %1351 = vmatprep.subr.bf16.mxu0 %v3470_v7  ;;  %1523 = vmatprep.subr.bf16.mxu1 %v3473_v8  ;;  %v3557_v7 = vld [vmem:[%s4792_s4 + $0x16c] ss:$16 sps:$4 sm:$0xff]   ;;  %v3552_v8 = vld [vmem:[%s4792_s4 + $0x160] ss:$16 sps:$4 sm:$0xff]  }
  0xbb   :  { %1352 = vmatpush1.bf16.msra.mxu0 %v3468_v9  ;;  %1524 = vmatpush1.bf16.msra.mxu1 %v3471_v10  ;;  %v3555_v9 = vld [vmem:[%s4792_s4 + $0x168] ss:$16 sps:$4 sm:$0xff]   ;;  %v3560_v10 = vld [vmem:[%s4792_s4 + $0x184] ss:$16 sps:$4 sm:$0xff]  }
  0xbc   :  { %1353 = vmatprep.subr.bf16.mxu0 %v3476_v11  ;;  %1525 = vmatprep.subr.bf16.mxu1 %v3479_v12  ;;  %v3563_v11 = vld [vmem:[%s4792_s4 + $0x18c] ss:$16 sps:$4 sm:$0xff]   ;;  %v3558_v12 = vld [vmem:[%s4792_s4 + $0x180] ss:$16 sps:$4 sm:$0xff]  }
  0xbf   :  { %1354 = vmatpush1.bf16.msra.mxu0 %v3474_v13  ;;  %1526 = vmatpush1.bf16.msra.mxu1 %v3477_v14  ;;  %v3561_v13 = vld [vmem:[%s4792_s4 + $0x188] ss:$16 sps:$4 sm:$0xff]   ;;  %v3566_v14 = vld [vmem:[%s4792_s4 + $0x1a4] ss:$16 sps:$4 sm:$0xff]  }
  0xc0   :  { %1366 = vmatprep.subr.bf16.mxu0 %v3482_v17  ;;  %1538 = vmatprep.subr.bf16.mxu1 %v3485_v18  ;;  %v3567_v17 = vld [vmem:[%s4792_s4 + $0x1a8] ss:$16 sps:$4 sm:$0xff]   ;;  %v3572_v18 = vld [vmem:[%s4792_s4 + $0x1c4] ss:$16 sps:$4 sm:$0xff]  }
  0xc2   :  { %1356 = vmatmul.mubr.bf16.vlgmr.msra.gmra.mrb[0].mxu0 %v54_v19  ;;  %1528 = vmatmul.mubr.bf16.vlgmr.msra.gmra.mrb[0].mxu1 %v54_v19  ;;  %v3575_v19 = vld [vmem:[%s4792_s4 + $0x1cc] ss:$16 sps:$4 sm:$0xff]  }
  0xc3   :  { %1367 = vmatpush1.bf16.msra.mxu0 %v3480_v20  ;;  %1539 = vmatpush1.bf16.msra.mxu1 %v3483_v21  ;;  %v3570_v20 = vld [vmem:[%s4792_s4 + $0x1c0] ss:$16 sps:$4 sm:$0xff]   ;;  %v3573_v21 = vld [vmem:[%s4792_s4 + $0x1c8] ss:$16 sps:$4 sm:$0xff]  }
  0xc4   :  { %1398 = vmatprep.mubr.bf16.mxu0 %v3661_v24  ;;  %1570 = vmatprep.mubr.bf16.mxu1 %v3661_v24 }
  0xc5   :  { %2256 = vmatprep.subr.bf16.mxu0 %v3488_v22  ;;  %2342 = vmatprep.subr.bf16.mxu1 %v3491_v23  ;;  %v3578_v22 = vld [vmem:[%s4792_s4 + $0x1e4] ss:$16 sps:$4 sm:$0xff]   ;;  %v3581_v23 = vld [vmem:[%s4792_s4 + $0x1ec] ss:$16 sps:$4 sm:$0xff]  }
  0xce   :  { %3005 = vmatmul.mubr.msk.bf16.vlgmr.msra.gmra.mrb[0].mxu0 %vm1233_vm0, %v56_v27  ;;  %3006 = vmatmul.mubr.msk.bf16.vlgmr.msra.gmra.mrb[0].mxu1 %vm1233_vm0, %v56_v27  ;;  %v3584_v27 = vld [vmem:[%s4792_s4 + $0x204] ss:$16 sps:$4 sm:$0xff]  }
  0xcf   :  { %2257 = vmatpush1.bf16.msra.mxu0 %v3486_v28  ;;  %2343 = vmatpush1.bf16.msra.mxu1 %v3489_v29  ;;  %v3587_v28 = vld [vmem:[%s4792_s4 + $0x20c] ss:$16 sps:$4 sm:$0xff]   ;;  %v1583_v29 = vlaneseq }
  0xd0   :  { %2258 = vmatprep.subr.bf16.mxu0 %v3494_v30  ;;  %2344 = vmatprep.subr.bf16.mxu1 %v3497_v31 }
  0xd1   :  { %v1584_v30 = vshrl.u32 %v1583_v29, 7  ;;  %v3605_v29 = vld [vmem:[%s4792_s4 + $0x26c] ss:$16 sps:$4 sm:$0xff]  }
  0xd3   :  { %2259 = vmatpush1.bf16.msra.mxu0 %v3492_v32  ;;  %2345 = vmatpush1.bf16.msra.mxu1 %v3495_v33  ;;  %v4549_v31 = vsub.s32 0, %v1584_v30  ;;  %v4551_v32 = vsub.s32 2, %v1584_v30  ;;  %v1581_v33 = vld [vmem:[%s4794_s2] sm:$0xf] }
  0xd4   :  { %2260 = vmatprep.subr.bf16.mxu0 %v3500_v34  ;;  %2346 = vmatprep.subr.bf16.mxu1 %v3503_v35  ;;  %v4556_v34 = vsub.s32 1, %v1584_v30  ;;  %v4558_v35 = vsub.s32 3, %v1584_v30  ;;  %v3600_v30 = vld [vmem:[%s4792_s4 + $0x260] ss:$16 sps:$4 sm:$0xff]  }
  0xd7   :  { %2261 = vmatpush1.bf16.msra.mxu0 %v3498_v36  ;;  %2347 = vmatpush1.bf16.msra.mxu1 %v3501_v37  ;;  %v1611_v36 = vld [vmem:[%s4795_s3] sm:$0xf]  ;;  %v1586_v37 = vrot.slane %v1581_v33, %v4549_v31 }
  0xd8   :  { %2262 = vmatprep.subr.bf16.mxu0 %v3506_v38  ;;  %2348 = vmatprep.subr.bf16.mxu1 %v3509_v39  ;;  %v1594_v38 = vrot.slane %v1581_v33, %v4551_v32  ;;  %v1590_v39 = vrot.slane %v1581_v33, %v4556_v34 }
  0xdb   :  { %2263 = vmatpush1.bf16.msra.mxu0 %v3504_v40  ;;  %2349 = vmatpush1.bf16.msra.mxu1 %v3507_v41  ;;  %v1598_v40 = vrot.slane %v1581_v33, %v4558_v35  ;;  %v1616_v41 = vrot.slane %v1611_v36, %v4549_v31  ;;  %v3603_v33 = vld [vmem:[%s4792_s4 + $0x268] ss:$16 sps:$4 sm:$0xff]  }
  0xdc   :  { %2264 = vmatprep.subr.bf16.mxu0 %v3512_v42  ;;  %2350 = vmatprep.subr.bf16.mxu1 %v3515_v43  ;;  %v1624_v42 = vrot.slane %v1611_v36, %v4551_v32 }
  0xdf   :  { %2265 = vmatpush1.bf16.msra.mxu0 %v3510_v44  ;;  %2351 = vmatpush1.bf16.msra.mxu1 %v3513_v45  ;;  %v1620_v45 = vrot.slane %v1611_v36, %v4556_v34 }
  0xe0   :  { %2266 = vmatprep.subr.bf16.mxu0 %v3518_v46  ;;  %2352 = vmatprep.subr.bf16.mxu1 %v3521_v47  ;;  %v1628_v46 = vrot.slane %v1611_v36, %v4558_v35  ;;  %v3608_v36 = vld [vmem:[%s4792_s4 + $0x284] ss:$16 sps:$4 sm:$0xff]  }
  0xe3   :  { %2267 = vmatpush1.bf16.msra.mxu0 %v3516_v48  ;;  %2353 = vmatpush1.bf16.msra.mxu1 %v3519_v49 }
  0xe4   :  { %2268 = vmatprep.subr.bf16.mxu0 %v3524_v50  ;;  %2354 = vmatprep.subr.bf16.mxu1 %v3527_v51 }
  0xe7   :  { %2269 = vmatpush1.bf16.msra.mxu0 %v3522_v52  ;;  %2355 = vmatpush1.bf16.msra.mxu1 %v3525_v53 }
  0xe8   :  { %2270 = vmatprep.subr.bf16.mxu0 %v3530_v54  ;;  %2356 = vmatprep.subr.bf16.mxu1 %v3533_v55 }
  0xeb   :  { %2271 = vmatpush1.bf16.msra.mxu0 %v3528_v56  ;;  %2357 = vmatpush1.bf16.msra.mxu1 %v3531_v57 }
  0xec   :  { %2272 = vmatprep.subr.bf16.mxu0 %v3536_v58  ;;  %2358 = vmatprep.subr.bf16.mxu1 %v3539_v59 }
  0xef   :  { %2273 = vmatpush1.bf16.msra.mxu0 %v3534_v60  ;;  %2359 = vmatpush1.bf16.msra.mxu1 %v3537_v61 }
  0xf0   :  { %2274 = vmatprep.subr.bf16.mxu0 %v3542_v62  ;;  %2360 = vmatprep.subr.bf16.mxu1 %v3545_v63 }
  0xf3   :  { %2275 = vmatpush1.bf16.msra.mxu0 %v3540_v0  ;;  %2361 = vmatpush1.bf16.msra.mxu1 %v3543_v1 }
  0xf4   :  { %2276 = vmatprep.subr.bf16.mxu0 %v3548_v2  ;;  %2362 = vmatprep.subr.bf16.mxu1 %v3551_v3 }
  0xf7   :  { %2277 = vmatpush1.bf16.msra.mxu0 %v3546_v4  ;;  %2363 = vmatpush1.bf16.msra.mxu1 %v3549_v5 }
  0xf8   :  { %2278 = vmatprep.subr.bf16.mxu0 %v3554_v6  ;;  %2364 = vmatprep.subr.bf16.mxu1 %v3557_v7 }
  0xfb   :  { %2279 = vmatpush1.bf16.msra.mxu0 %v3552_v8  ;;  %2365 = vmatpush1.bf16.msra.mxu1 %v3555_v9 }
  0xfc   :  { %2280 = vmatprep.subr.bf16.mxu0 %v3560_v10  ;;  %2366 = vmatprep.subr.bf16.mxu1 %v3563_v11 }
  0xff   :  { %2281 = vmatpush1.bf16.msra.mxu0 %v3558_v12  ;;  %2367 = vmatpush1.bf16.msra.mxu1 %v3561_v13 }
 0x100   :  { %2282 = vmatprep.subr.bf16.mxu0 %v3566_v14  ;;  %2368 = vmatprep.subr.bf16.mxu1 %v3569_v15 }
 0x103   :  { %2283 = vmatpush1.bf16.msra.mxu0 %v3564_v16  ;;  %2369 = vmatpush1.bf16.msra.mxu1 %v3567_v17  ;;  %v3582_v17 = vld [vmem:[%s4792_s4 + $0x200] ss:$16 sps:$4 sm:$0xff]  }
 0x104   :  { %2284 = vmatprep.subr.bf16.mxu0 %v3572_v18  ;;  %2370 = vmatprep.subr.bf16.mxu1 %v3575_v19  ;;  %v3585_v18 = vld [vmem:[%s4792_s4 + $0x208] ss:$16 sps:$4 sm:$0xff]   ;;  %v3590_v19 = vld [vmem:[%s4792_s4 + $0x224] ss:$16 sps:$4 sm:$0xff]  }
 0x107   :  { %2285 = vmatpush1.bf16.msra.mxu0 %v3570_v20  ;;  %2371 = vmatpush1.bf16.msra.mxu1 %v3573_v21  ;;  %v3593_v20 = vld [vmem:[%s4792_s4 + $0x22c] ss:$16 sps:$4 sm:$0xff]   ;;  %v3588_v21 = vld [vmem:[%s4792_s4 + $0x220] ss:$16 sps:$4 sm:$0xff]  }
 0x108   :  { %2286 = vmatprep.subr.bf16.mxu0 %v3578_v22  ;;  %2372 = vmatprep.subr.bf16.mxu1 %v3581_v23  ;;  %v3591_v22 = vld [vmem:[%s4792_s4 + $0x228] ss:$16 sps:$4 sm:$0xff]   ;;  %v3596_v23 = vld [vmem:[%s4792_s4 + $0x244] ss:$16 sps:$4 sm:$0xff]  }
 0x10b   :  { %2287 = vmatpush1.bf16.msra.mxu0 %v3576_v25  ;;  %2373 = vmatpush1.bf16.msra.mxu1 %v3579_v26  ;;  %v3599_v25 = vld [vmem:[%s4792_s4 + $0x24c] ss:$16 sps:$4 sm:$0xff]   ;;  %v3594_v26 = vld [vmem:[%s4792_s4 + $0x240] ss:$16 sps:$4 sm:$0xff]  }
 0x10c   :  { %2299 = vmatprep.subr.bf16.mxu0 %v3584_v27  ;;  %2385 = vmatprep.subr.bf16.mxu1 %v3587_v28  ;;  %v3597_v27 = vld [vmem:[%s4792_s4 + $0x248] ss:$16 sps:$4 sm:$0xff]   ;;  %v3602_v28 = vld [vmem:[%s4792_s4 + $0x264] ss:$16 sps:$4 sm:$0xff]  }
 0x1a1   :  { %v1400_v43 = vpop.f32.mrb[0].mxu0  ;;  %v1572_v44 = vpop.f32.mrb[0].mxu1 }
 0x1a2   :  { %v1603_v47 = vmul.f32 %v1586_v37, %v1400_v43  ;;  %v1605_v48 = vmul.f32 %v1594_v38, %v1572_v44  ;;  %v1402_v49 = vpop.f32.mrb[1].mxu0  ;;  %v1574_v50 = vpop.f32.mrb[1].mxu1  ;;  %v3615_v43 = vld [vmem:[%s4792_s4 + $0x2a8] ss:$16 sps:$4 sm:$0xff]   ;;  %v3620_v44 = vld [vmem:[%s4792_s4 + $0x2c4] ss:$16 sps:$4 sm:$0xff]  }
 0x1a3   :  { %v1604_v51 = vmul.f32 %v1590_v39, %v1402_v49  ;;  %v1606_v52 = vmul.f32 %v1598_v40, %v1574_v50  ;;  %v1404_v53 = vpop.f32.mrb[2].mxu0  ;;  %v1576_v54 = vpop.f32.mrb[2].mxu1  ;;  %v3629_v49 = vld [vmem:[%s4792_s4 + $0x2ec] ss:$16 sps:$4 sm:$0xff]   ;;  %v3624_v50 = vld [vmem:[%s4792_s4 + $0x2e0] ss:$16 sps:$4 sm:$0xff]  }
 0x1a4   :  { %v1633_v55 = vadd.f32 %v1616_v41, %v1603_v47  ;;  %v1635_v56 = vadd.f32 %v1624_v42, %v1605_v48  ;;  %v1607_v57 = vmul.f32 %v1586_v37, %v1404_v53  ;;  %v1609_v58 = vmul.f32 %v1594_v38, %v1576_v54  ;;  %v1406_v59 = vpop.f32.mrb[3].mxu0  ;;  %v1578_v60 = vpop.f32.mrb[3].mxu1  ;;  %v3611_v37 = vld [vmem:[%s4792_s4 + $0x28c] ss:$16 sps:$4 sm:$0xff]   ;;  %v3606_v38 = vld [vmem:[%s4792_s4 + $0x280] ss:$16 sps:$4 sm:$0xff]  }
 0x1a5   :  { %v1634_v61 = vadd.f32 %v1620_v45, %v1604_v51  ;;  %v1636_v62 = vadd.f32 %v1628_v46, %v1606_v52  ;;  %v1608_v63 = vmul.f32 %v1590_v39, %v1406_v59  ;;  %v1610_v0 = vmul.f32 %v1598_v40, %v1578_v60  ;;  %v3609_v39 = vld [vmem:[%s4792_s4 + $0x288] ss:$16 sps:$4 sm:$0xff]   ;;  %v3614_v40 = vld [vmem:[%s4792_s4 + $0x2a4] ss:$16 sps:$4 sm:$0xff]   ;;  %v3635_v53 = vld [vmem:[%s4792_s4 + $0x30c] ss:$16 sps:$4 sm:$0xff]  }
 0x1a6   :  { %v1637_v1 = vadd.f32 %v1616_v41, %v1607_v57  ;;  %v1639_v2 = vadd.f32 %v1624_v42, %v1609_v58  ;;  %v1641_v5 = vmax.f32 %v1633_v55, 0.0  ;;  %v1643_v6 = vmax.f32 %v1635_v56, 0.0  ;;  %v3617_v41 = vld [vmem:[%s4792_s4 + $0x2ac] ss:$16 sps:$4 sm:$0xff]   ;;  %v3612_v42 = vld [vmem:[%s4792_s4 + $0x2a0] ss:$16 sps:$4 sm:$0xff]  }
 0x1a7   :  { %v1638_v3 = vadd.f32 %v1620_v45, %v1608_v63  ;;  %v1640_v4 = vadd.f32 %v1628_v46, %v1610_v0  ;;  %v1642_v9 = vmax.f32 %v1634_v61, 0.0  ;;  %v1644_v10 = vmax.f32 %v1636_v62, 0.0  ;;  %v3623_v45 = vld [vmem:[%s4792_s4 + $0x2cc] ss:$16 sps:$4 sm:$0xff]   ;;  %v3618_v46 = vld [vmem:[%s4792_s4 + $0x2c0] ss:$16 sps:$4 sm:$0xff]  }
 0x1a8   :  { %v1645_v7 = vmax.f32 %v1637_v1, 0.0  ;;  %v1647_v8 = vmax.f32 %v1639_v2, 0.0  ;;  %v3621_v47 = vld [vmem:[%s4792_s4 + $0x2c8] ss:$16 sps:$4 sm:$0xff]   ;;  %v3626_v48 = vld [vmem:[%s4792_s4 + $0x2e4] ss:$16 sps:$4 sm:$0xff]  }
 0x1a9   :  { %v1646_v11 = vmax.f32 %v1638_v3, 0.0  ;;  %v1648_v12 = vmax.f32 %v1640_v4, 0.0  ;;  %v3627_v51 = vld [vmem:[%s4792_s4 + $0x2e8] ss:$16 sps:$4 sm:$0xff]   ;;  %v3632_v52 = vld [vmem:[%s4792_s4 + $0x304] ss:$16 sps:$4 sm:$0xff]  }
 0x1aa   :  { %v1649_v13 = vpack.c.bf16 %v1645_v7, %v1641_v5  ;;  %v4571_v14 = vpack.c.bf16 %v1647_v8, %v1643_v6  ;;  %v3630_v54 = vld [vmem:[%s4792_s4 + $0x300] ss:$16 sps:$4 sm:$0xff]   ;;  %v3633_v55 = vld [vmem:[%s4792_s4 + $0x308] ss:$16 sps:$4 sm:$0xff]  }
 0x1ab   :  { %v1652_v15 = vpack.c.bf16 %v1648_v12, %v1644_v10  ;;  %v1650_v16 = vpack.c.bf16 %v1646_v11, %v1642_v9  ;;  %v3637_v56 = vld [vmem:[%s4793_s7 + $0x40] sm:$0xff]   ;;  %v3640_v59 = vld [vmem:[%s4793_s7 + $0x48] sm:$0xff]   ;;  %v3643_v62 = vld [vmem:[%s4793_s7 + $0x50] sm:$0xff]  }
 0x1ac   :  { %v3636_v57 = vld [vmem:[%s4793_s7 + $0x80] sm:$0xff]   ;;  %v3639_v60 = vld [vmem:[%s4793_s7 + $0x88] sm:$0xff]   ;;  %v3642_v63 = vld [vmem:[%s4793_s7 + $0x90] sm:$0xff]  }
 0x1ad   :  { %2288 = vmatprep.mubr.bf16.mxu0 %v1650_v16  ;;  %2374 = vmatprep.mubr.bf16.mxu1 %v1650_v16  ;;  %v3638_v58 = vld [vmem:[%s4793_s7] sm:$0xff]   ;;  %v3641_v61 = vld [vmem:[%s4793_s7 + $0x8] sm:$0xff]   ;;  %v3644_v0 = vld [vmem:[%s4793_s7 + $0x10] sm:$0xff]  }
 0x1ae   :  { %2289 = vmatmul.mubr.bf16.vlgmr.msra.gmra.mrb[4].mxu0 %v1649_v13  ;;  %2375 = vmatmul.mubr.bf16.vlgmr.msra.gmra.mrb[4].mxu1 %v1649_v13  ;;  %v3646_v1 = vld [vmem:[%s4793_s7 + $0x58] sm:$0xff]   ;;  %v3649_v4 = vld [vmem:[%s4793_s7 + $0x60] sm:$0xff]   ;;  %v3651_v7 = vld [vmem:[%s4793_s7 + $0xa8] sm:$0xff]  }
 0x1af   :  { %2300 = vmatpush1.bf16.msra.mxu0 %v3582_v17  ;;  %2386 = vmatpush1.bf16.msra.mxu1 %v3585_v18  ;;  %v3645_v2 = vld [vmem:[%s4793_s7 + $0x98] sm:$0xff]   ;;  %v3648_v5 = vld [vmem:[%s4793_s7 + $0xa0] sm:$0xff]   ;;  %v3652_v8 = vld [vmem:[%s4793_s7 + $0x68] sm:$0xff]  }
 0x1b0   :  { %3107 = vmatprep.mubr.msk.bf16.mxu0 %vm1233_vm0, %v1652_v15  ;;  %3108 = vmatprep.mubr.msk.bf16.mxu1 %vm1233_vm0, %v1652_v15  ;;  %v3647_v3 = vld [vmem:[%s4793_s7 + $0x18] sm:$0xff]   ;;  %v3650_v6 = vld [vmem:[%s4793_s7 + $0x20] sm:$0xff]   ;;  %v3653_v9 = vld [vmem:[%s4793_s7 + $0x28] sm:$0xff]  }
 0x1b1   :  { %2301 = vmatprep.subr.bf16.mxu0 %v3590_v19  ;;  %2387 = vmatprep.subr.bf16.mxu1 %v3593_v20  ;;  %v3654_v10 = vld [vmem:[%s4793_s7 + $0xb0] sm:$0xff]   ;;  %v3657_v13 = vld [vmem:[%s4793_s7 + $0xb8] sm:$0xff]   ;;  %v3660_v16 = vld [vmem:[%s4793_s7 + $0xc0] sm:$0xff]  }
 0x1b2   :  { %v3655_v11 = vld [vmem:[%s4793_s7 + $0x70] sm:$0xff]   ;;  %v3659_v15 = vld [vmem:[%s4793_s7 + $0x38] sm:$0xff]   ;;  %v2428_v17 = vld [vmem:[%s4796_s5] sm:$0xf] }
 0x1b3   :  { %2302 = vmatpush1.bf16.msra.mxu0 %v3588_v21  ;;  %2388 = vmatpush1.bf16.msra.mxu1 %v3591_v22  ;;  %v3656_v12 = vld [vmem:[%s4793_s7 + $0x30] sm:$0xff]   ;;  %v2458_v18 = vld [vmem:[%s4797_s6] sm:$0xf]  ;;  %v2441_v19 = vrot.slane %v2428_v17, %v4551_v32  ;;  %v2437_v20 = vrot.slane %v2428_v17, %v4556_v34  ;;  %v2445_v21 = vrot.slane %v2428_v17, %v4558_v35 }
 0x1b4   :  { %2303 = vmatprep.subr.bf16.mxu0 %v3596_v23  ;;  %2389 = vmatprep.subr.bf16.mxu1 %v3599_v25  ;;  %v2463_v22 = vrot.slane %v2458_v18, %v4549_v31  ;;  %v2471_v23 = vrot.slane %v2458_v18, %v4551_v32 }
 0x1b7   :  { %2304 = vmatpush1.bf16.msra.mxu0 %v3594_v26  ;;  %2390 = vmatpush1.bf16.msra.mxu1 %v3597_v27  ;;  %v2467_v27 = vrot.slane %v2458_v18, %v4556_v34 }
 0x1b8   :  { %2305 = vmatprep.subr.bf16.mxu0 %v3602_v28  ;;  %2391 = vmatprep.subr.bf16.mxu1 %v3605_v29  ;;  %v2475_v28 = vrot.slane %v2458_v18, %v4558_v35 }
 0x1bb   :  { %2306 = vmatpush1.bf16.msra.mxu0 %v3600_v30  ;;  %2392 = vmatpush1.bf16.msra.mxu1 %v3603_v33 }
 0x1bc   :  { %2307 = vmatprep.subr.bf16.mxu0 %v3608_v36  ;;  %2393 = vmatprep.subr.bf16.mxu1 %v3611_v37 }
 0x1bf   :  { %2308 = vmatpush1.bf16.msra.mxu0 %v3606_v38  ;;  %2394 = vmatpush1.bf16.msra.mxu1 %v3609_v39 }
 0x1c0   :  { %2309 = vmatprep.subr.bf16.mxu0 %v3614_v40  ;;  %2395 = vmatprep.subr.bf16.mxu1 %v3617_v41 }
 0x1c3   :  { %2310 = vmatpush1.bf16.msra.mxu0 %v3612_v42  ;;  %2396 = vmatpush1.bf16.msra.mxu1 %v3615_v43 }
 0x1c4   :  { %2311 = vmatprep.subr.bf16.mxu0 %v3620_v44  ;;  %2397 = vmatprep.subr.bf16.mxu1 %v3623_v45 }
 0x1c7   :  { %2312 = vmatpush1.bf16.msra.mxu0 %v3618_v46  ;;  %2398 = vmatpush1.bf16.msra.mxu1 %v3621_v47 }
 0x1c8   :  { %2313 = vmatprep.subr.bf16.mxu0 %v3626_v48  ;;  %2399 = vmatprep.subr.bf16.mxu1 %v3629_v49 }
 0x1cb   :  { %2314 = vmatpush1.bf16.msra.mxu0 %v3624_v50  ;;  %2400 = vmatpush1.bf16.msra.mxu1 %v3627_v51 }
 0x1cc   :  { %2315 = vmatprep.subr.bf16.mxu0 %v3632_v52  ;;  %2401 = vmatprep.subr.bf16.mxu1 %v3635_v53 }
 0x1cf   :  { %2316 = vmatpush1.bf16.msra.mxu0 %v3630_v54  ;;  %2402 = vmatpush1.bf16.msra.mxu1 %v3633_v55 }
 0x1d0   :  { %2744 = vmatprep.subr.bf16.mxu1 %v3661_v24  ;;  %3137 = vmatprep.subr.bf16.mxu0 %v3637_v56 }
 0x1d2   :  { %2332 = vmatmul.mubr.bf16.vlgmr.msra.gmra.mrb[4].mxu0 %v4571_v14  ;;  %2418 = vmatmul.mubr.bf16.vlgmr.msra.gmra.mrb[4].mxu1 %v4571_v14  ;;  %v3658_v14 = vld [vmem:[%s4793_s7 + $0x78] sm:$0xff]  }
 0x1d3   :  { %2745 = vmatpush1.bf16.msra.mxu1 %v3636_v57  ;;  %3138 = vmatpush3.bf16.msra.mxu0 %v3638_v58 }
 0x1d4   :  { %2746 = vmatprep.subr.bf16.mxu1 %v3661_v24  ;;  %3139 = vmatprep.subr.bf16.mxu0 %v3640_v59 }
 0x1d7   :  { %2747 = vmatpush1.bf16.msra.mxu1 %v3639_v60  ;;  %3140 = vmatpush3.bf16.msra.mxu0 %v3641_v61 }
 0x1d8   :  { %2748 = vmatprep.subr.bf16.mxu1 %v3661_v24  ;;  %3141 = vmatprep.subr.bf16.mxu0 %v3643_v62 }
 0x1db   :  { %2749 = vmatpush1.bf16.msra.mxu1 %v3642_v63  ;;  %3142 = vmatpush3.bf16.msra.mxu0 %v3644_v0 }
 0x1dc   :  { %2750 = vmatprep.subr.bf16.mxu1 %v3661_v24  ;;  %3143 = vmatprep.subr.bf16.mxu0 %v3646_v1 }
 0x1df   :  { %2751 = vmatpush1.bf16.msra.mxu1 %v3645_v2  ;;  %3144 = vmatpush3.bf16.msra.mxu0 %v3647_v3 }
 0x1e0   :  { %2752 = vmatprep.subr.bf16.mxu1 %v3661_v24  ;;  %3145 = vmatprep.subr.bf16.mxu0 %v3649_v4 }
 0x1e3   :  { %2753 = vmatpush1.bf16.msra.mxu1 %v3648_v5  ;;  %3146 = vmatpush3.bf16.msra.mxu0 %v3650_v6  ;;  %v3135_v6 = vld [vmem:[%s4798_s8] ss:$0 sm:$0xff] }
 0x1e4   :  { %2754 = vmatprep.subr.bf16.mxu1 %v3661_v24  ;;  %3147 = vmatprep.subr.bf16.mxu0 %v3652_v8 }
 0x1e7   :  { %2755 = vmatpush1.bf16.msra.mxu1 %v3651_v7  ;;  %3148 = vmatpush3.bf16.msra.mxu0 %v3653_v9 }
 0x1e8   :  { %2756 = vmatprep.subr.bf16.mxu1 %v3661_v24  ;;  %3149 = vmatprep.subr.bf16.mxu0 %v3655_v11  ;;  %v3136_v11 = vld [vmem:[%s4799_s9] ss:$0 sm:$0xff] }
 0x1eb   :  { %2757 = vmatpush1.bf16.msra.mxu1 %v3654_v10  ;;  %3150 = vmatpush3.bf16.msra.mxu0 %v3656_v12 }
 0x1ec   :  { %2758 = vmatprep.subr.bf16.mxu1 %v3661_v24  ;;  %3151 = vmatprep.subr.bf16.mxu0 %v3658_v14 }
 0x1ef   :  { %2759 = vmatpush1.bf16.msra.mxu1 %v3657_v13  ;;  %3152 = vmatpush3.bf16.msra.mxu0 %v3659_v15 }
 0x1f0   :  { %2760 = vmatprep.subr.bf16.mxu1 %v3661_v24  ;;  %v2433_v24 = vrot.slane %v2428_v17, %v4549_v31 }
 0x1f3   :  { %2761 = vmatpush1.bf16.msra.mxu1 %v3660_v16 }
 0x2a5   :  { %v2333_v25 = vpop.f32.mrb[4].mxu0  ;;  %v2419_v26 = vpop.f32.mrb[4].mxu1 }
 0x2a6   :  { %v2450_v29 = vmul.f32 %v2433_v24, %v2333_v25  ;;  %v2452_v30 = vmul.f32 %v2441_v19, %v2419_v26  ;;  %v2335_v33 = vpop.f32.mrb[5].mxu0  ;;  %v2421_v36 = vpop.f32.mrb[5].mxu1 }
 0x2a7   :  { %v2451_v37 = vmul.f32 %v2437_v20, %v2335_v33  ;;  %v2453_v38 = vmul.f32 %v2445_v21, %v2421_v36  ;;  %v2337_v39 = vpop.f32.mrb[6].mxu0  ;;  %v2423_v40 = vpop.f32.mrb[6].mxu1 }
 0x2a8   :  { %v2480_v41 = vadd.f32 %v2463_v22, %v2450_v29  ;;  %v2482_v42 = vadd.f32 %v2471_v23, %v2452_v30  ;;  %v2454_v43 = vmul.f32 %v2433_v24, %v2337_v39  ;;  %v2456_v31 = vmul.f32 %v2441_v19, %v2423_v40  ;;  %v2339_v44 = vpop.f32.mrb[7].mxu0  ;;  %v2425_v32 = vpop.f32.mrb[7].mxu1 }
 0x2a9   :  { %v2481_v45 = vadd.f32 %v2467_v27, %v2451_v37  ;;  %v2483_v46 = vadd.f32 %v2475_v28, %v2453_v38  ;;  %v2455_v47 = vmul.f32 %v2437_v20, %v2339_v44  ;;  %v2457_v34 = vmul.f32 %v2445_v21, %v2425_v32 }
 0x2aa   :  { %v2484_v48 = vadd.f32 %v2463_v22, %v2454_v43  ;;  %v2486_v35 = vadd.f32 %v2471_v23, %v2456_v31  ;;  %v2488_v51 = vmax.f32 %v2480_v41, 0.0  ;;  %v2490_v52 = vmax.f32 %v2482_v42, 0.0 }
 0x2ab   :  { %v2485_v49 = vadd.f32 %v2467_v27, %v2455_v47  ;;  %v2487_v50 = vadd.f32 %v2475_v28, %v2457_v34  ;;  %v2489_v55 = vmax.f32 %v2481_v45, 0.0  ;;  %v2491_v56 = vmax.f32 %v2483_v46, 0.0 }
 0x2ac   :  { %v2492_v53 = vmax.f32 %v2484_v48, 0.0  ;;  %v2494_v54 = vmax.f32 %v2486_v35, 0.0 }
 0x2ad   :  { %v2493_v57 = vmax.f32 %v2485_v49, 0.0  ;;  %v2495_v58 = vmax.f32 %v2487_v50, 0.0 }
 0x2ae   :  { %v2496_v59 = vpack.c.bf16 %v2492_v53, %v2488_v51  ;;  %v2498_v60 = vpack.c.bf16 %v2494_v54, %v2490_v52 }
 0x2af   :  { %v2499_v61 = vpack.c.bf16 %v2495_v58, %v2491_v56  ;;  %v2497_v62 = vpack.c.bf16 %v2493_v57, %v2489_v55 }
 0x2b1   :  { %2735 = vmatprep.mubr.bf16.mxu0 %v2497_v62  ;;  %3134 = vmatprep.mubr.msk.bf16.mxu1 %vm1233_vm0, %v2499_v61 }
 0x2b2   :  { %2736 = vmatmul.mubr.bf16.vlgmr.msra.gmra.mrb[8].mxu0 %v2496_v59  ;;  %2777 = vmatmul.mubr.bf16.vlgmr.msra.gmra.mrb[8].mxu1 %v2498_v60 }
 0x385   :  { %v3153_v63 = vpop.f32.mrb[8].mxu0  ;;  %v2778_v0 = vpop.f32.mrb[8].mxu1 }
 0x386   :  { %v3154_v1 = vpop.f32.mrb[9].mxu0  ;;  %v2780_v2 = vpop.f32.mrb[9].mxu1 }
 0x387   :  { %v3155_v3 = vadd.f32 %v3154_v1, %v3153_v63  ;;  %v3156_v4 = vpop.f32.mrb[10].mxu0  ;;  %v2781_v5 = vpop.f32.mrb[10].mxu1 }
 0x388   :  { %v3157_v7 = vpop.f32.mrb[11].mxu0  ;;  %v2783_v8 = vpop.f32.mrb[11].mxu1 }
 0x389   :  { %v2779_v9 = vadd.f32 %v3155_v3, %v2778_v0  ;;  %v3158_v10 = vadd.f32 %v3157_v7, %v3156_v4 }
 0x38b   :  { %v2792_v12 = vmul.f32 %v3135_v6, %v2779_v9  ;;  %v2782_v13 = vadd.f32 %v3158_v10, %v2781_v5 }
 0x38d   :  { %v2801_v14 = vadd.f32 %v3136_v11, %v2792_v12  ;;  %v2793_v15 = vmul.f32 %v3135_v6, %v2782_v13 }
 0x38f   :  { %2803 = vst [vmem:[%s4800_s10] sm:$0xff] %v2801_v14  ;;  %v2802_v16 = vadd.f32 %v3136_v11, %v2793_v15 }
 0x391   :  { %2804 = vst [vmem:[%s4800_s10 + $0x8] sm:$0xff] %v2802_v16 }

</bundles_post_ra>
